<compile_context>
chip_gen: v6e
topology: v6e:2x2x1
jax: 0.10.0
libtpu: 0.0.40
codegen_flags: <defaults>
</compile_context>

<pallas_src>
import math
import jax
import jax.numpy as jnp
from jax.experimental import pallas as pl
from jax.experimental.pallas import tpu as pltpu

# ---- small synthetic config (distilgpt2-like, scaled down) ----
B = 2          # batch
S = 8          # sequence length (ctx)
E = 32         # n_embd
H = 4          # attention heads
D = E // H     # head dim
L = 2          # number of transformer blocks
FF = 4 * E     # ff_hidden_mult = 4
V = 64         # vocab size
VP = 128       # vocab padded to a full 128-lane width (lane-dense store)
BS = B * S
LN_EPS = 1e-5


def _layernorm(h, g, b):
    mu = jnp.mean(h, axis=-1, keepdims=True)
    var = jnp.mean((h - mu) ** 2, axis=-1, keepdims=True)
    return (h - mu) * jax.lax.rsqrt(var + LN_EPS) * g + b


def gpt2_kernel(x_ref, mask_ref,
                ln1w_ref, ln1b_ref, wqkv_ref, bqkv_ref, wproj_ref, bproj_ref,
                ln2w_ref, ln2b_ref, wfc_ref, bfc_ref, wmp_ref, bmp_ref,
                lnfw_ref, lnfb_ref, headw_ref, headb_ref,
                out_ref):
    # One grid step == one sequence. x_ref: (S, E) f32; out_ref: (S, VP) f32.
    f32 = jnp.float32
    bf16 = jnp.bfloat16
    inv_sqrt_d = 1.0 / math.sqrt(D)

    h = x_ref[...]                         # (S, E) f32
    addmask = mask_ref[...]                # (1, S, S) f32 additive causal mask

    for l in range(L):                     # static unroll (L small)
        # ---- causal multi-head self-attention (heads batched) ----
        a = _layernorm(h, ln1w_ref[l], ln1b_ref[l])
        qkv = jnp.dot(a.astype(bf16), wqkv_ref[l],
                      preferred_element_type=f32) + bqkv_ref[l]      # (S, 3E)
        q = qkv[:, 0 * E:1 * E] * inv_sqrt_d                          # fold 1/sqrt(D)
        k = qkv[:, 1 * E:2 * E]
        v = qkv[:, 2 * E:3 * E]
        qh = jnp.swapaxes(q.reshape(S, H, D), 0, 1).astype(bf16)     # (H, S, D)
        kh = jnp.swapaxes(k.reshape(S, H, D), 0, 1).astype(bf16)
        vh = jnp.swapaxes(v.reshape(S, H, D), 0, 1).astype(bf16)

        s = jnp.einsum('hqd,hkd->hqk', qh, kh,
                       preferred_element_type=f32) + addmask          # (H, S, S) f32
        s_max = jnp.max(s, axis=-1, keepdims=True)
        e = jnp.exp(s - s_max)                                        # f32 (EUP)
        denom = jnp.sum(e, axis=-1, keepdims=True)
        p = e * pl.reciprocal(denom, approx=True)                     # EUP, VALU-free

        ctx = jnp.einsum('hqk,hkd->hqd', p.astype(bf16), vh,
                         preferred_element_type=f32)                  # (H, S, D)
        ctx = jnp.swapaxes(ctx, 0, 1).reshape(S, E)

        h = h + jnp.dot(ctx.astype(bf16), wproj_ref[l],
                        preferred_element_type=f32) + bproj_ref[l]

        # ---- MLP (gelu_new / tanh approx); elementwise math stays f32 ----
        m = _layernorm(h, ln2w_ref[l], ln2b_ref[l])
        ffh = jnp.dot(m.astype(bf16), wfc_ref[l],
                      preferred_element_type=f32) + bfc_ref[l]
        ffh = jax.nn.gelu(ffh, approximate=True)
        h = h + jnp.dot(ffh.astype(bf16), wmp_ref[l],
                        preferred_element_type=f32) + bmp_ref[l]

    # ---- final layernorm + lm_head (nn.Linear(n_embd, vocab, bias=True)) ----
    h = _layernorm(h, lnfw_ref[...], lnfb_ref[...])
    out_ref[...] = jnp.dot(h.astype(bf16), headw_ref[...],
                           preferred_element_type=f32) + headb_ref[...]   # (S, VP)


def init_params(key):
    ks = jax.random.split(key, 20)
    n = lambda k, shape, s=0.02: s * jax.random.normal(k, shape, dtype=jnp.float32)
    headw = n(ks[16], (E, V))     # (in, out) == torch Linear weight.T
    headb = n(ks[17], (1, V))
    P = {
        "wte":  n(ks[0], (V, E)),
        "wpe":  n(ks[1], (S, E)),
        "ln1w": 1.0 + n(ks[2], (L, E)),
        "ln1b": n(ks[3], (L, E)),
        "wqkv": n(ks[4], (L, E, 3 * E)).astype(jnp.bfloat16),
        "bqkv": n(ks[5], (L, 3 * E)),
        "wproj": n(ks[6], (L, E, E)).astype(jnp.bfloat16),
        "bproj": n(ks[7], (L, E)),
        "ln2w": 1.0 + n(ks[8], (L, E)),
        "ln2b": n(ks[9], (L, E)),
        "wfc":  n(ks[10], (L, E, FF)).astype(jnp.bfloat16),
        "bfc":  n(ks[11], (L, FF)),
        "wmp":  n(ks[12], (L, FF, E)).astype(jnp.bfloat16),
        "bmp":  n(ks[13], (L, E)),
        "lnfw": 1.0 + n(ks[14], (1, E)),
        "lnfb": n(ks[15], (1, E)),
        # lm_head padded ONCE at init to a full 128-lane output width
        "headw": jnp.pad(headw, ((0, 0), (0, VP - V))).astype(jnp.bfloat16),
        "headb": jnp.pad(headb, ((0, 0), (0, VP - V))),
    }
    return P


_WEIGHT_ORDER = ["ln1w", "ln1b", "wqkv", "bqkv", "wproj", "bproj",
                 "ln2w", "ln2b", "wfc", "bfc", "wmp", "bmp",
                 "lnfw", "lnfb", "headw", "headb"]


def _causal_additive_mask():
    qi = jax.lax.broadcasted_iota(jnp.int32, (S, S), 0)
    ki = jax.lax.broadcasted_iota(jnp.int32, (S, S), 1)
    return jnp.where(ki <= qi, 0.0, -1e30).astype(jnp.float32)[None]   # (1, S, S)


def _resident_spec(arr):
    """Whole-array VMEM-resident block, constant across the grid (no re-fetch)."""
    nd = arr.ndim
    return pl.BlockSpec(arr.shape, lambda b, _nd=nd: (0,) * _nd)


def gpt2_forward(tokens, P):
    # glue: embedding gather + reshapes stay in plain JAX (wrapper-side).
    x = (P["wte"][tokens] + P["wpe"][jnp.arange(S)][None, :, :]).reshape(BS, E)
    mask = _causal_additive_mask()
    weights = [P[name] for name in _WEIGHT_ORDER]

    flops = B * (L * (2 * S * E * 3 * E            # qkv proj
                      + 2 * 2 * H * S * S * D      # QK^T and PV
                      + 2 * S * E * E              # attn out proj
                      + 2 * 2 * S * E * FF)        # MLP fc + proj
                 + 2 * S * E * VP)                 # lm_head
    transcendentals = B * (L * (H * S * S + S * FF) + (2 * L + 1) * S)
    bytes_accessed = (x.size * x.dtype.itemsize
                      + mask.size * mask.dtype.itemsize
                      + sum(w.size * w.dtype.itemsize for w in weights)
                      + BS * VP * 4)

    in_specs = ([pl.BlockSpec((S, E), lambda b: (b, 0))]        # per-sequence rows
                + [_resident_spec(mask)]
                + [_resident_spec(w) for w in weights])
    out_specs = pl.BlockSpec((S, VP), lambda b: (b, 0))          # lane-dense store

    logits_padded = pl.pallas_call(
        gpt2_kernel,
        out_shape=jax.ShapeDtypeStruct((BS, VP), jnp.float32),
        grid=(B,),
        in_specs=in_specs,
        out_specs=out_specs,
        compiler_params=pltpu.CompilerParams(
            dimension_semantics=("parallel",)),   # second TC on v7x; no-op on v5e/v6e
        cost_estimate=pl.CostEstimate(flops=int(flops),
                                      transcendentals=int(transcendentals),
                                      bytes_accessed=int(bytes_accessed)),
    )(x, mask, *weights)
    return logits_padded.reshape(B, S, VP)[:, :, :V]


def ref_forward(tokens, P):
    """Pure-JAX reference mirroring the kernel math (bf16 matmul operands,
    f32 accumulation, exact softmax divide)."""
    bf16, f32 = jnp.bfloat16, jnp.float32

    def mm(a, b):
        return jnp.dot(a.astype(bf16), b.astype(bf16), preferred_element_type=f32)

    x = P["wte"][tokens] + P["wpe"][jnp.arange(S)][None, :, :]
    qi = jax.lax.broadcasted_iota(jnp.int32, (S, S), 0)
    ki = jax.lax.broadcasted_iota(jnp.int32, (S, S), 1)
    addmask = jnp.where(ki <= qi, 0.0, -1e30)[None, None]        # (1,1,S,S)
    inv_sqrt_d = 1.0 / math.sqrt(D)

    h = x.reshape(BS, E)
    for l in range(L):
        a = _layernorm(h, P["ln1w"][l], P["ln1b"][l])
        qkv = mm(a, P["wqkv"][l]) + P["bqkv"][l]
        q = (qkv[:, :E] * inv_sqrt_d).reshape(B, S, H, D)
        k = qkv[:, E:2 * E].reshape(B, S, H, D)
        v = qkv[:, 2 * E:].reshape(B, S, H, D)
        s = jnp.einsum('bqhd,bkhd->bhqk', q.astype(bf16), k.astype(bf16),
                       preferred_element_type=f32) + addmask
        p = jax.nn.softmax(s, axis=-1)
        ctx = jnp.einsum('bhqk,bkhd->bqhd', p.astype(bf16), v.astype(bf16),
                         preferred_element_type=f32).reshape(BS, E)
        h = h + mm(ctx, P["wproj"][l]) + P["bproj"][l]
        m = _layernorm(h, P["ln2w"][l], P["ln2b"][l])
        ffh = jax.nn.gelu(mm(m, P["wfc"][l]) + P["bfc"][l], approximate=True)
        h = h + mm(ffh, P["wmp"][l]) + P["bmp"][l]

    h = _layernorm(h, P["lnfw"], P["lnfb"])
    logits = mm(h, P["headw"]) + P["headb"]
    return logits.reshape(B, S, VP)[:, :, :V]


if __name__ == "__main__":
    key = jax.random.PRNGKey(0)
    kp, kt = jax.random.split(key)
    params = init_params(kp)
    tokens = jax.random.randint(kt, (B, S), 0, V, dtype=jnp.int32)

    logits = gpt2_forward(tokens, params)
    jax.block_until_ready(logits)

    ref = ref_forward(tokens, params)
    assert logits.shape == (B, S, V)
    assert jnp.allclose(logits, ref, rtol=2e-3, atol=2e-3), "mismatch vs JAX reference"

    print("KERNEL_OK")
</pallas_src>

<mosaic_0001>
module attributes {stable_mosaic.version = 11 : i64} {
  func.func @gpt2_kernel(%arg0: i32, %arg1: memref<8x32xf32, #tpu.memory_space<vmem>>, %arg2: memref<1x8x8xf32, #tpu.memory_space<vmem>>, %arg3: memref<2x32xf32, #tpu.memory_space<vmem>>, %arg4: memref<2x32xf32, #tpu.memory_space<vmem>>, %arg5: memref<2x32x96xbf16, #tpu.memory_space<vmem>>, %arg6: memref<2x96xf32, #tpu.memory_space<vmem>>, %arg7: memref<2x32x32xbf16, #tpu.memory_space<vmem>>, %arg8: memref<2x32xf32, #tpu.memory_space<vmem>>, %arg9: memref<2x32xf32, #tpu.memory_space<vmem>>, %arg10: memref<2x32xf32, #tpu.memory_space<vmem>>, %arg11: memref<2x32x128xbf16, #tpu.memory_space<vmem>>, %arg12: memref<2x128xf32, #tpu.memory_space<vmem>>, %arg13: memref<2x128x32xbf16, #tpu.memory_space<vmem>>, %arg14: memref<2x32xf32, #tpu.memory_space<vmem>>, %arg15: memref<1x32xf32, #tpu.memory_space<vmem>>, %arg16: memref<1x32xf32, #tpu.memory_space<vmem>>, %arg17: memref<32x128xbf16, #tpu.memory_space<vmem>>, %arg18: memref<1x128xf32, #tpu.memory_space<vmem>>, %arg19: memref<8x128xf32, #tpu.memory_space<vmem>>) attributes {dimension_semantics = [#tpu.dimension_semantics<parallel>], iteration_bounds = array<i64: 2>, scalar_prefetch = 0 : i64, scratch_operands = 0 : i64, tpu.core_type = #tpu.core_type<tc>, window_params = [{transform_indices = @transform_0, window_bounds = array<i64: 8, 32>}, {pipeline_mode = #tpu.pipeline_mode<synchronous>, transform_indices = @transform_1, window_bounds = array<i64: 1, 8, 8>}, {pipeline_mode = #tpu.pipeline_mode<synchronous>, transform_indices = @transform_2, window_bounds = array<i64: 2, 32>}, {pipeline_mode = #tpu.pipeline_mode<synchronous>, transform_indices = @transform_3, window_bounds = array<i64: 2, 32>}, {pipeline_mode = #tpu.pipeline_mode<synchronous>, transform_indices = @transform_4, window_bounds = array<i64: 2, 32, 96>}, {pipeline_mode = #tpu.pipeline_mode<synchronous>, transform_indices = @transform_5, window_bounds = array<i64: 2, 96>}, {pipeline_mode = #tpu.pipeline_mode<synchronous>, transform_indices = @transform_6, window_bounds = array<i64: 2, 32, 32>}, {pipeline_mode = #tpu.pipeline_mode<synchronous>, transform_indices = @transform_7, window_bounds = array<i64: 2, 32>}, {pipeline_mode = #tpu.pipeline_mode<synchronous>, transform_indices = @transform_8, window_bounds = array<i64: 2, 32>}, {pipeline_mode = #tpu.pipeline_mode<synchronous>, transform_indices = @transform_9, window_bounds = array<i64: 2, 32>}, {pipeline_mode = #tpu.pipeline_mode<synchronous>, transform_indices = @transform_10, window_bounds = array<i64: 2, 32, 128>}, {pipeline_mode = #tpu.pipeline_mode<synchronous>, transform_indices = @transform_11, window_bounds = array<i64: 2, 128>}, {pipeline_mode = #tpu.pipeline_mode<synchronous>, transform_indices = @transform_12, window_bounds = array<i64: 2, 128, 32>}, {pipeline_mode = #tpu.pipeline_mode<synchronous>, transform_indices = @transform_13, window_bounds = array<i64: 2, 32>}, {pipeline_mode = #tpu.pipeline_mode<synchronous>, transform_indices = @transform_14, window_bounds = array<i64: 1, 32>}, {pipeline_mode = #tpu.pipeline_mode<synchronous>, transform_indices = @transform_15, window_bounds = array<i64: 1, 32>}, {pipeline_mode = #tpu.pipeline_mode<synchronous>, transform_indices = @transform_16, window_bounds = array<i64: 32, 128>}, {pipeline_mode = #tpu.pipeline_mode<synchronous>, transform_indices = @transform_17, window_bounds = array<i64: 1, 128>}, {transform_indices = @transform_18, window_bounds = array<i64: 8, 128>}]} {
    %c0 = arith.constant 0 : index
    %c0_0 = arith.constant 0 : index
    %0 = vector.load %arg1[%c0, %c0_0] : memref<8x32xf32, #tpu.memory_space<vmem>>, vector<8x32xf32>
    %c0_1 = arith.constant 0 : index
    %c0_2 = arith.constant 0 : index
    %c0_3 = arith.constant 0 : index
    %1 = vector.load %arg2[%c0_1, %c0_2, %c0_3] : memref<1x8x8xf32, #tpu.memory_space<vmem>>, vector<1x8x8xf32>
    %c0_4 = arith.constant 0 : index
    %c0_5 = arith.constant 0 : index
    %2 = vector.load %arg3[%c0_4, %c0_5] : memref<2x32xf32, #tpu.memory_space<vmem>>, vector<1x32xf32>
    %3 = vector.shape_cast %2 : vector<1x32xf32> to vector<32xf32>
    %c0_6 = arith.constant 0 : index
    %c0_7 = arith.constant 0 : index
    %4 = vector.load %arg4[%c0_6, %c0_7] : memref<2x32xf32, #tpu.memory_space<vmem>>, vector<1x32xf32>
    %5 = vector.shape_cast %4 : vector<1x32xf32> to vector<32xf32>
    %cst = arith.constant dense<0.000000e+00> : vector<8xf32>
    %6 = vector.multi_reduction <add>, %0, %cst [1] : vector<8x32xf32> to vector<8xf32>
    %7 = vector.shape_cast %6 : vector<8xf32> to vector<8x1xf32>
    %cst_8 = arith.constant 3.200000e+01 : f32
    %8 = vector.broadcast %cst_8 : f32 to vector<8x1xf32>
    %9 = arith.divf %7, %8 : vector<8x1xf32>
    %10 = vector.broadcast %9 : vector<8x1xf32> to vector<8x32xf32>
    %11 = arith.subf %0, %10 : vector<8x32xf32>
    %12 = arith.mulf %11, %11 : vector<8x32xf32>
    %cst_9 = arith.constant dense<0.000000e+00> : vector<8xf32>
    %13 = vector.multi_reduction <add>, %12, %cst_9 [1] : vector<8x32xf32> to vector<8xf32>
    %14 = vector.shape_cast %13 : vector<8xf32> to vector<8x1xf32>
    %cst_10 = arith.constant 3.200000e+01 : f32
    %15 = vector.broadcast %cst_10 : f32 to vector<8x1xf32>
    %16 = arith.divf %14, %15 : vector<8x1xf32>
    %17 = vector.broadcast %9 : vector<8x1xf32> to vector<8x32xf32>
    %18 = arith.subf %0, %17 : vector<8x32xf32>
    %cst_11 = arith.constant 9.99999974E-6 : f32
    %19 = vector.broadcast %cst_11 : f32 to vector<8x1xf32>
    %20 = arith.addf %16, %19 : vector<8x1xf32>
    %21 = math.rsqrt %20 : vector<8x1xf32>
    %22 = vector.broadcast %21 : vector<8x1xf32> to vector<8x32xf32>
    %23 = arith.mulf %18, %22 : vector<8x32xf32>
    %24 = vector.shape_cast %3 : vector<32xf32> to vector<1x32xf32>
    %25 = vector.broadcast %24 : vector<1x32xf32> to vector<8x32xf32>
    %26 = arith.mulf %23, %25 : vector<8x32xf32>
    %27 = vector.shape_cast %5 : vector<32xf32> to vector<1x32xf32>
    %28 = vector.broadcast %27 : vector<1x32xf32> to vector<8x32xf32>
    %29 = arith.addf %26, %28 : vector<8x32xf32>
    %30 = arith.truncf %29 : vector<8x32xf32> to vector<8x32xbf16>
    %c0_12 = arith.constant 0 : index
    %c0_13 = arith.constant 0 : index
    %c0_14 = arith.constant 0 : index
    %31 = vector.load %arg5[%c0_12, %c0_13, %c0_14] : memref<2x32x96xbf16, #tpu.memory_space<vmem>>, vector<1x32x96xbf16>
    %32 = vector.shape_cast %31 : vector<1x32x96xbf16> to vector<32x96xbf16>
    %cst_15 = arith.constant dense<0.000000e+00> : vector<8x96xf32>
    %33 = tpu.matmul %30, %32, %cst_15 {dimension_numbers = #tpu.dot_dimension_numbers<[1], [0], [0], [1], [0, 0, 1, 1], [], []>} : vector<8x32xbf16>, vector<32x96xbf16>, vector<8x96xf32> -> vector<8x96xf32>
    %c0_16 = arith.constant 0 : index
    %c0_17 = arith.constant 0 : index
    %34 = vector.load %arg6[%c0_16, %c0_17] : memref<2x96xf32, #tpu.memory_space<vmem>>, vector<1x96xf32>
    %35 = vector.shape_cast %34 : vector<1x96xf32> to vector<96xf32>
    %36 = vector.shape_cast %35 : vector<96xf32> to vector<1x96xf32>
    %37 = vector.broadcast %36 : vector<1x96xf32> to vector<8x96xf32>
    %38 = arith.addf %33, %37 : vector<8x96xf32>
    %39 = vector.extract_strided_slice %38 {offsets = [0, 0], sizes = [8, 32], strides = [1, 1]} : vector<8x96xf32> to vector<8x32xf32>
    %cst_18 = arith.constant 0.353553385 : f32
    %40 = vector.broadcast %cst_18 : f32 to vector<8x32xf32>
    %41 = arith.mulf %39, %40 : vector<8x32xf32>
    %42 = vector.extract_strided_slice %38 {offsets = [0, 32], sizes = [8, 32], strides = [1, 1]} : vector<8x96xf32> to vector<8x32xf32>
    %43 = vector.extract_strided_slice %38 {offsets = [0, 64], sizes = [8, 32], strides = [1, 1]} : vector<8x96xf32> to vector<8x32xf32>
    %44 = vector.shape_cast %41 : vector<8x32xf32> to vector<8x4x8xf32>
    %45 = tpu.transpose %44, [1, 0, 2] : vector<8x4x8xf32> -> vector<4x8x8xf32>
    %46 = arith.truncf %45 : vector<4x8x8xf32> to vector<4x8x8xbf16>
    %47 = vector.shape_cast %42 : vector<8x32xf32> to vector<8x4x8xf32>
    %48 = tpu.transpose %47, [1, 0, 2] : vector<8x4x8xf32> -> vector<4x8x8xf32>
    %49 = arith.truncf %48 : vector<4x8x8xf32> to vector<4x8x8xbf16>
    %50 = vector.shape_cast %43 : vector<8x32xf32> to vector<8x4x8xf32>
    %51 = tpu.transpose %50, [1, 0, 2] : vector<8x4x8xf32> -> vector<4x8x8xf32>
    %52 = arith.truncf %51 : vector<4x8x8xf32> to vector<4x8x8xbf16>
    "tpu.trace_start"() <{level = 10 : i32, message = "hqd,hkd->hqk"}> : () -> ()
    %cst_19 = arith.constant dense<0.000000e+00> : vector<4x8x8xf32>
    %53 = tpu.matmul %46, %49, %cst_19 {dimension_numbers = #tpu.dot_dimension_numbers<[2], [2], [1], [1], [0, 0, 0, 1, 1, 1], [0], [0]>} : vector<4x8x8xbf16>, vector<4x8x8xbf16>, vector<4x8x8xf32> -> vector<4x8x8xf32>
    "tpu.trace_stop"() : () -> ()
    %54 = vector.broadcast %1 : vector<1x8x8xf32> to vector<4x8x8xf32>
    %55 = arith.addf %53, %54 : vector<4x8x8xf32>
    %cst_20 = arith.constant dense<0xFF800000> : vector<4x8xf32>
    %56 = vector.multi_reduction <maximumf>, %55, %cst_20 [2] : vector<4x8x8xf32> to vector<4x8xf32>
    %57 = vector.shape_cast %56 : vector<4x8xf32> to vector<4x8x1xf32>
    %58 = vector.broadcast %57 : vector<4x8x1xf32> to vector<4x8x8xf32>
    %59 = arith.subf %55, %58 : vector<4x8x8xf32>
    %60 = math.exp %59 : vector<4x8x8xf32>
    %cst_21 = arith.constant dense<0.000000e+00> : vector<4x8xf32>
    %61 = vector.multi_reduction <add>, %60, %cst_21 [2] : vector<4x8x8xf32> to vector<4x8xf32>
    %62 = vector.shape_cast %61 : vector<4x8xf32> to vector<4x8x1xf32>
    %63 = tpu.reciprocal %62 {approx = true} : vector<4x8x1xf32> -> vector<4x8x1xf32>
    %64 = vector.broadcast %63 : vector<4x8x1xf32> to vector<4x8x8xf32>
    %65 = arith.mulf %60, %64 : vector<4x8x8xf32>
    %66 = arith.truncf %65 : vector<4x8x8xf32> to vector<4x8x8xbf16>
    "tpu.trace_start"() <{level = 10 : i32, message = "hqk,hkd->hqd"}> : () -> ()
    %cst_22 = arith.constant dense<0.000000e+00> : vector<4x8x8xf32>
    %67 = tpu.matmul %66, %52, %cst_22 {dimension_numbers = #tpu.dot_dimension_numbers<[2], [1], [1], [2], [0, 0, 0, 1, 1, 2], [0], [0]>} : vector<4x8x8xbf16>, vector<4x8x8xbf16>, vector<4x8x8xf32> -> vector<4x8x8xf32>
    "tpu.trace_stop"() : () -> ()
    %68 = tpu.transpose %67, [1, 0, 2] : vector<4x8x8xf32> -> vector<8x4x8xf32>
    %69 = vector.shape_cast %68 : vector<8x4x8xf32> to vector<8x32xf32>
    %70 = arith.truncf %69 : vector<8x32xf32> to vector<8x32xbf16>
    %c0_23 = arith.constant 0 : index
    %c0_24 = arith.constant 0 : index
    %c0_25 = arith.constant 0 : index
    %71 = vector.load %arg7[%c0_23, %c0_24, %c0_25] : memref<2x32x32xbf16, #tpu.memory_space<vmem>>, vector<1x32x32xbf16>
    %72 = vector.shape_cast %71 : vector<1x32x32xbf16> to vector<32x32xbf16>
    %cst_26 = arith.constant dense<0.000000e+00> : vector<8x32xf32>
    %73 = tpu.matmul %70, %72, %cst_26 {dimension_numbers = #tpu.dot_dimension_numbers<[1], [0], [0], [1], [0, 0, 1, 1], [], []>} : vector<8x32xbf16>, vector<32x32xbf16>, vector<8x32xf32> -> vector<8x32xf32>
    %74 = arith.addf %0, %73 : vector<8x32xf32>
    %c0_27 = arith.constant 0 : index
    %c0_28 = arith.constant 0 : index
    %75 = vector.load %arg8[%c0_27, %c0_28] : memref<2x32xf32, #tpu.memory_space<vmem>>, vector<1x32xf32>
    %76 = vector.shape_cast %75 : vector<1x32xf32> to vector<32xf32>
    %77 = vector.shape_cast %76 : vector<32xf32> to vector<1x32xf32>
    %78 = vector.broadcast %77 : vector<1x32xf32> to vector<8x32xf32>
    %79 = arith.addf %74, %78 : vector<8x32xf32>
    %c0_29 = arith.constant 0 : index
    %c0_30 = arith.constant 0 : index
    %80 = vector.load %arg9[%c0_29, %c0_30] : memref<2x32xf32, #tpu.memory_space<vmem>>, vector<1x32xf32>
    %81 = vector.shape_cast %80 : vector<1x32xf32> to vector<32xf32>
    %c0_31 = arith.constant 0 : index
    %c0_32 = arith.constant 0 : index
    %82 = vector.load %arg10[%c0_31, %c0_32] : memref<2x32xf32, #tpu.memory_space<vmem>>, vector<1x32xf32>
    %83 = vector.shape_cast %82 : vector<1x32xf32> to vector<32xf32>
    %cst_33 = arith.constant dense<0.000000e+00> : vector<8xf32>
    %84 = vector.multi_reduction <add>, %79, %cst_33 [1] : vector<8x32xf32> to vector<8xf32>
    %85 = vector.shape_cast %84 : vector<8xf32> to vector<8x1xf32>
    %cst_34 = arith.constant 3.200000e+01 : f32
    %86 = vector.broadcast %cst_34 : f32 to vector<8x1xf32>
    %87 = arith.divf %85, %86 : vector<8x1xf32>
    %88 = vector.broadcast %87 : vector<8x1xf32> to vector<8x32xf32>
    %89 = arith.subf %79, %88 : vector<8x32xf32>
    %90 = arith.mulf %89, %89 : vector<8x32xf32>
    %cst_35 = arith.constant dense<0.000000e+00> : vector<8xf32>
    %91 = vector.multi_reduction <add>, %90, %cst_35 [1] : vector<8x32xf32> to vector<8xf32>
    %92 = vector.shape_cast %91 : vector<8xf32> to vector<8x1xf32>
    %cst_36 = arith.constant 3.200000e+01 : f32
    %93 = vector.broadcast %cst_36 : f32 to vector<8x1xf32>
    %94 = arith.divf %92, %93 : vector<8x1xf32>
    %95 = vector.broadcast %87 : vector<8x1xf32> to vector<8x32xf32>
    %96 = arith.subf %79, %95 : vector<8x32xf32>
    %cst_37 = arith.constant 9.99999974E-6 : f32
    %97 = vector.broadcast %cst_37 : f32 to vector<8x1xf32>
    %98 = arith.addf %94, %97 : vector<8x1xf32>
    %99 = math.rsqrt %98 : vector<8x1xf32>
    %100 = vector.broadcast %99 : vector<8x1xf32> to vector<8x32xf32>
    %101 = arith.mulf %96, %100 : vector<8x32xf32>
    %102 = vector.shape_cast %81 : vector<32xf32> to vector<1x32xf32>
    %103 = vector.broadcast %102 : vector<1x32xf32> to vector<8x32xf32>
    %104 = arith.mulf %101, %103 : vector<8x32xf32>
    %105 = vector.shape_cast %83 : vector<32xf32> to vector<1x32xf32>
    %106 = vector.broadcast %105 : vector<1x32xf32> to vector<8x32xf32>
    %107 = arith.addf %104, %106 : vector<8x32xf32>
    %108 = arith.truncf %107 : vector<8x32xf32> to vector<8x32xbf16>
    %c0_38 = arith.constant 0 : index
    %c0_39 = arith.constant 0 : index
    %c0_40 = arith.constant 0 : index
    %109 = vector.load %arg11[%c0_38, %c0_39, %c0_40] : memref<2x32x128xbf16, #tpu.memory_space<vmem>>, vector<1x32x128xbf16>
    %110 = vector.shape_cast %109 : vector<1x32x128xbf16> to vector<32x128xbf16>
    %cst_41 = arith.constant dense<0.000000e+00> : vector<8x128xf32>
    %111 = tpu.matmul %108, %110, %cst_41 {dimension_numbers = #tpu.dot_dimension_numbers<[1], [0], [0], [1], [0, 0, 1, 1], [], []>} : vector<8x32xbf16>, vector<32x128xbf16>, vector<8x128xf32> -> vector<8x128xf32>
    %c0_42 = arith.constant 0 : index
    %c0_43 = arith.constant 0 : index
    %112 = vector.load %arg12[%c0_42, %c0_43] : memref<2x128xf32, #tpu.memory_space<vmem>>, vector<1x128xf32>
    %113 = vector.shape_cast %112 : vector<1x128xf32> to vector<128xf32>
    %114 = vector.shape_cast %113 : vector<128xf32> to vector<1x128xf32>
    %115 = vector.broadcast %114 : vector<1x128xf32> to vector<8x128xf32>
    %116 = arith.addf %111, %115 : vector<8x128xf32>
    %117 = arith.mulf %116, %116 : vector<8x128xf32>
    %118 = arith.mulf %116, %117 : vector<8x128xf32>
    %cst_44 = arith.constant 4.471500e-02 : f32
    %119 = vector.broadcast %cst_44 : f32 to vector<8x128xf32>
    %120 = arith.mulf %119, %118 : vector<8x128xf32>
    %121 = arith.addf %116, %120 : vector<8x128xf32>
    %cst_45 = arith.constant 0.797884583 : f32
    %122 = vector.broadcast %cst_45 : f32 to vector<8x128xf32>
    %123 = arith.mulf %122, %121 : vector<8x128xf32>
    %124 = math.tanh %123 : vector<8x128xf32>
    %cst_46 = arith.constant 1.000000e+00 : f32
    %125 = vector.broadcast %cst_46 : f32 to vector<8x128xf32>
    %126 = arith.addf %125, %124 : vector<8x128xf32>
    %cst_47 = arith.constant 5.000000e-01 : f32
    %127 = vector.broadcast %cst_47 : f32 to vector<8x128xf32>
    %128 = arith.mulf %127, %126 : vector<8x128xf32>
    %129 = arith.mulf %116, %128 : vector<8x128xf32>
    %130 = arith.truncf %129 : vector<8x128xf32> to vector<8x128xbf16>
    %c0_48 = arith.constant 0 : index
    %c0_49 = arith.constant 0 : index
    %c0_50 = arith.constant 0 : index
    %131 = vector.load %arg13[%c0_48, %c0_49, %c0_50] : memref<2x128x32xbf16, #tpu.memory_space<vmem>>, vector<1x128x32xbf16>
    %132 = vector.shape_cast %131 : vector<1x128x32xbf16> to vector<128x32xbf16>
    %cst_51 = arith.constant dense<0.000000e+00> : vector<8x32xf32>
    %133 = tpu.matmul %130, %132, %cst_51 {dimension_numbers = #tpu.dot_dimension_numbers<[1], [0], [0], [1], [0, 0, 1, 1], [], []>} : vector<8x128xbf16>, vector<128x32xbf16>, vector<8x32xf32> -> vector<8x32xf32>
    %134 = arith.addf %79, %133 : vector<8x32xf32>
    %c0_52 = arith.constant 0 : index
    %c0_53 = arith.constant 0 : index
    %135 = vector.load %arg14[%c0_52, %c0_53] : memref<2x32xf32, #tpu.memory_space<vmem>>, vector<1x32xf32>
    %136 = vector.shape_cast %135 : vector<1x32xf32> to vector<32xf32>
    %137 = vector.shape_cast %136 : vector<32xf32> to vector<1x32xf32>
    %138 = vector.broadcast %137 : vector<1x32xf32> to vector<8x32xf32>
    %139 = arith.addf %134, %138 : vector<8x32xf32>
    %c1 = arith.constant 1 : index
    %c0_54 = arith.constant 0 : index
    %140 = vector.load %arg3[%c1, %c0_54] : memref<2x32xf32, #tpu.memory_space<vmem>>, vector<1x32xf32>
    %141 = vector.shape_cast %140 : vector<1x32xf32> to vector<32xf32>
    %c1_55 = arith.constant 1 : index
    %c0_56 = arith.constant 0 : index
    %142 = vector.load %arg4[%c1_55, %c0_56] : memref<2x32xf32, #tpu.memory_space<vmem>>, vector<1x32xf32>
    %143 = vector.shape_cast %142 : vector<1x32xf32> to vector<32xf32>
    %cst_57 = arith.constant dense<0.000000e+00> : vector<8xf32>
    %144 = vector.multi_reduction <add>, %139, %cst_57 [1] : vector<8x32xf32> to vector<8xf32>
    %145 = vector.shape_cast %144 : vector<8xf32> to vector<8x1xf32>
    %cst_58 = arith.constant 3.200000e+01 : f32
    %146 = vector.broadcast %cst_58 : f32 to vector<8x1xf32>
    %147 = arith.divf %145, %146 : vector<8x1xf32>
    %148 = vector.broadcast %147 : vector<8x1xf32> to vector<8x32xf32>
    %149 = arith.subf %139, %148 : vector<8x32xf32>
    %150 = arith.mulf %149, %149 : vector<8x32xf32>
    %cst_59 = arith.constant dense<0.000000e+00> : vector<8xf32>
    %151 = vector.multi_reduction <add>, %150, %cst_59 [1] : vector<8x32xf32> to vector<8xf32>
    %152 = vector.shape_cast %151 : vector<8xf32> to vector<8x1xf32>
    %cst_60 = arith.constant 3.200000e+01 : f32
    %153 = vector.broadcast %cst_60 : f32 to vector<8x1xf32>
    %154 = arith.divf %152, %153 : vector<8x1xf32>
    %155 = vector.broadcast %147 : vector<8x1xf32> to vector<8x32xf32>
    %156 = arith.subf %139, %155 : vector<8x32xf32>
    %cst_61 = arith.constant 9.99999974E-6 : f32
    %157 = vector.broadcast %cst_61 : f32 to vector<8x1xf32>
    %158 = arith.addf %154, %157 : vector<8x1xf32>
    %159 = math.rsqrt %158 : vector<8x1xf32>
    %160 = vector.broadcast %159 : vector<8x1xf32> to vector<8x32xf32>
    %161 = arith.mulf %156, %160 : vector<8x32xf32>
    %162 = vector.shape_cast %141 : vector<32xf32> to vector<1x32xf32>
    %163 = vector.broadcast %162 : vector<1x32xf32> to vector<8x32xf32>
    %164 = arith.mulf %161, %163 : vector<8x32xf32>
    %165 = vector.shape_cast %143 : vector<32xf32> to vector<1x32xf32>
    %166 = vector.broadcast %165 : vector<1x32xf32> to vector<8x32xf32>
    %167 = arith.addf %164, %166 : vector<8x32xf32>
    %168 = arith.truncf %167 : vector<8x32xf32> to vector<8x32xbf16>
    %c1_62 = arith.constant 1 : index
    %c0_63 = arith.constant 0 : index
    %c0_64 = arith.constant 0 : index
    %169 = vector.load %arg5[%c1_62, %c0_63, %c0_64] : memref<2x32x96xbf16, #tpu.memory_space<vmem>>, vector<1x32x96xbf16>
    %170 = vector.shape_cast %169 : vector<1x32x96xbf16> to vector<32x96xbf16>
    %cst_65 = arith.constant dense<0.000000e+00> : vector<8x96xf32>
    %171 = tpu.matmul %168, %170, %cst_65 {dimension_numbers = #tpu.dot_dimension_numbers<[1], [0], [0], [1], [0, 0, 1, 1], [], []>} : vector<8x32xbf16>, vector<32x96xbf16>, vector<8x96xf32> -> vector<8x96xf32>
    %c1_66 = arith.constant 1 : index
    %c0_67 = arith.constant 0 : index
    %172 = vector.load %arg6[%c1_66, %c0_67] : memref<2x96xf32, #tpu.memory_space<vmem>>, vector<1x96xf32>
    %173 = vector.shape_cast %172 : vector<1x96xf32> to vector<96xf32>
    %174 = vector.shape_cast %173 : vector<96xf32> to vector<1x96xf32>
    %175 = vector.broadcast %174 : vector<1x96xf32> to vector<8x96xf32>
    %176 = arith.addf %171, %175 : vector<8x96xf32>
    %177 = vector.extract_strided_slice %176 {offsets = [0, 0], sizes = [8, 32], strides = [1, 1]} : vector<8x96xf32> to vector<8x32xf32>
    %cst_68 = arith.constant 0.353553385 : f32
    %178 = vector.broadcast %cst_68 : f32 to vector<8x32xf32>
    %179 = arith.mulf %177, %178 : vector<8x32xf32>
    %180 = vector.extract_strided_slice %176 {offsets = [0, 32], sizes = [8, 32], strides = [1, 1]} : vector<8x96xf32> to vector<8x32xf32>
    %181 = vector.extract_strided_slice %176 {offsets = [0, 64], sizes = [8, 32], strides = [1, 1]} : vector<8x96xf32> to vector<8x32xf32>
    %182 = vector.shape_cast %179 : vector<8x32xf32> to vector<8x4x8xf32>
    %183 = tpu.transpose %182, [1, 0, 2] : vector<8x4x8xf32> -> vector<4x8x8xf32>
    %184 = arith.truncf %183 : vector<4x8x8xf32> to vector<4x8x8xbf16>
    %185 = vector.shape_cast %180 : vector<8x32xf32> to vector<8x4x8xf32>
    %186 = tpu.transpose %185, [1, 0, 2] : vector<8x4x8xf32> -> vector<4x8x8xf32>
    %187 = arith.truncf %186 : vector<4x8x8xf32> to vector<4x8x8xbf16>
    %188 = vector.shape_cast %181 : vector<8x32xf32> to vector<8x4x8xf32>
    %189 = tpu.transpose %188, [1, 0, 2] : vector<8x4x8xf32> -> vector<4x8x8xf32>
    %190 = arith.truncf %189 : vector<4x8x8xf32> to vector<4x8x8xbf16>
    "tpu.trace_start"() <{level = 10 : i32, message = "hqd,hkd->hqk"}> : () -> ()
    %cst_69 = arith.constant dense<0.000000e+00> : vector<4x8x8xf32>
    %191 = tpu.matmul %184, %187, %cst_69 {dimension_numbers = #tpu.dot_dimension_numbers<[2], [2], [1], [1], [0, 0, 0, 1, 1, 1], [0], [0]>} : vector<4x8x8xbf16>, vector<4x8x8xbf16>, vector<4x8x8xf32> -> vector<4x8x8xf32>
    "tpu.trace_stop"() : () -> ()
    %192 = vector.broadcast %1 : vector<1x8x8xf32> to vector<4x8x8xf32>
    %193 = arith.addf %191, %192 : vector<4x8x8xf32>
    %cst_70 = arith.constant dense<0xFF800000> : vector<4x8xf32>
    %194 = vector.multi_reduction <maximumf>, %193, %cst_70 [2] : vector<4x8x8xf32> to vector<4x8xf32>
    %195 = vector.shape_cast %194 : vector<4x8xf32> to vector<4x8x1xf32>
    %196 = vector.broadcast %195 : vector<4x8x1xf32> to vector<4x8x8xf32>
    %197 = arith.subf %193, %196 : vector<4x8x8xf32>
    %198 = math.exp %197 : vector<4x8x8xf32>
    %cst_71 = arith.constant dense<0.000000e+00> : vector<4x8xf32>
    %199 = vector.multi_reduction <add>, %198, %cst_71 [2] : vector<4x8x8xf32> to vector<4x8xf32>
    %200 = vector.shape_cast %199 : vector<4x8xf32> to vector<4x8x1xf32>
    %201 = tpu.reciprocal %200 {approx = true} : vector<4x8x1xf32> -> vector<4x8x1xf32>
    %202 = vector.broadcast %201 : vector<4x8x1xf32> to vector<4x8x8xf32>
    %203 = arith.mulf %198, %202 : vector<4x8x8xf32>
    %204 = arith.truncf %203 : vector<4x8x8xf32> to vector<4x8x8xbf16>
    "tpu.trace_start"() <{level = 10 : i32, message = "hqk,hkd->hqd"}> : () -> ()
    %cst_72 = arith.constant dense<0.000000e+00> : vector<4x8x8xf32>
    %205 = tpu.matmul %204, %190, %cst_72 {dimension_numbers = #tpu.dot_dimension_numbers<[2], [1], [1], [2], [0, 0, 0, 1, 1, 2], [0], [0]>} : vector<4x8x8xbf16>, vector<4x8x8xbf16>, vector<4x8x8xf32> -> vector<4x8x8xf32>
    "tpu.trace_stop"() : () -> ()
    %206 = tpu.transpose %205, [1, 0, 2] : vector<4x8x8xf32> -> vector<8x4x8xf32>
    %207 = vector.shape_cast %206 : vector<8x4x8xf32> to vector<8x32xf32>
    %208 = arith.truncf %207 : vector<8x32xf32> to vector<8x32xbf16>
    %c1_73 = arith.constant 1 : index
    %c0_74 = arith.constant 0 : index
    %c0_75 = arith.constant 0 : index
    %209 = vector.load %arg7[%c1_73, %c0_74, %c0_75] : memref<2x32x32xbf16, #tpu.memory_space<vmem>>, vector<1x32x32xbf16>
    %210 = vector.shape_cast %209 : vector<1x32x32xbf16> to vector<32x32xbf16>
    %cst_76 = arith.constant dense<0.000000e+00> : vector<8x32xf32>
    %211 = tpu.matmul %208, %210, %cst_76 {dimension_numbers = #tpu.dot_dimension_numbers<[1], [0], [0], [1], [0, 0, 1, 1], [], []>} : vector<8x32xbf16>, vector<32x32xbf16>, vector<8x32xf32> -> vector<8x32xf32>
    %212 = arith.addf %139, %211 : vector<8x32xf32>
    %c1_77 = arith.constant 1 : index
    %c0_78 = arith.constant 0 : index
    %213 = vector.load %arg8[%c1_77, %c0_78] : memref<2x32xf32, #tpu.memory_space<vmem>>, vector<1x32xf32>
    %214 = vector.shape_cast %213 : vector<1x32xf32> to vector<32xf32>
    %215 = vector.shape_cast %214 : vector<32xf32> to vector<1x32xf32>
    %216 = vector.broadcast %215 : vector<1x32xf32> to vector<8x32xf32>
    %217 = arith.addf %212, %216 : vector<8x32xf32>
    %c1_79 = arith.constant 1 : index
    %c0_80 = arith.constant 0 : index
    %218 = vector.load %arg9[%c1_79, %c0_80] : memref<2x32xf32, #tpu.memory_space<vmem>>, vector<1x32xf32>
    %219 = vector.shape_cast %218 : vector<1x32xf32> to vector<32xf32>
    %c1_81 = arith.constant 1 : index
    %c0_82 = arith.constant 0 : index
    %220 = vector.load %arg10[%c1_81, %c0_82] : memref<2x32xf32, #tpu.memory_space<vmem>>, vector<1x32xf32>
    %221 = vector.shape_cast %220 : vector<1x32xf32> to vector<32xf32>
    %cst_83 = arith.constant dense<0.000000e+00> : vector<8xf32>
    %222 = vector.multi_reduction <add>, %217, %cst_83 [1] : vector<8x32xf32> to vector<8xf32>
    %223 = vector.shape_cast %222 : vector<8xf32> to vector<8x1xf32>
    %cst_84 = arith.constant 3.200000e+01 : f32
    %224 = vector.broadcast %cst_84 : f32 to vector<8x1xf32>
    %225 = arith.divf %223, %224 : vector<8x1xf32>
    %226 = vector.broadcast %225 : vector<8x1xf32> to vector<8x32xf32>
    %227 = arith.subf %217, %226 : vector<8x32xf32>
    %228 = arith.mulf %227, %227 : vector<8x32xf32>
    %cst_85 = arith.constant dense<0.000000e+00> : vector<8xf32>
    %229 = vector.multi_reduction <add>, %228, %cst_85 [1] : vector<8x32xf32> to vector<8xf32>
    %230 = vector.shape_cast %229 : vector<8xf32> to vector<8x1xf32>
    %cst_86 = arith.constant 3.200000e+01 : f32
    %231 = vector.broadcast %cst_86 : f32 to vector<8x1xf32>
    %232 = arith.divf %230, %231 : vector<8x1xf32>
    %233 = vector.broadcast %225 : vector<8x1xf32> to vector<8x32xf32>
    %234 = arith.subf %217, %233 : vector<8x32xf32>
    %cst_87 = arith.constant 9.99999974E-6 : f32
    %235 = vector.broadcast %cst_87 : f32 to vector<8x1xf32>
    %236 = arith.addf %232, %235 : vector<8x1xf32>
    %237 = math.rsqrt %236 : vector<8x1xf32>
    %238 = vector.broadcast %237 : vector<8x1xf32> to vector<8x32xf32>
    %239 = arith.mulf %234, %238 : vector<8x32xf32>
    %240 = vector.shape_cast %219 : vector<32xf32> to vector<1x32xf32>
    %241 = vector.broadcast %240 : vector<1x32xf32> to vector<8x32xf32>
    %242 = arith.mulf %239, %241 : vector<8x32xf32>
    %243 = vector.shape_cast %221 : vector<32xf32> to vector<1x32xf32>
    %244 = vector.broadcast %243 : vector<1x32xf32> to vector<8x32xf32>
    %245 = arith.addf %242, %244 : vector<8x32xf32>
    %246 = arith.truncf %245 : vector<8x32xf32> to vector<8x32xbf16>
    %c1_88 = arith.constant 1 : index
    %c0_89 = arith.constant 0 : index
    %c0_90 = arith.constant 0 : index
    %247 = vector.load %arg11[%c1_88, %c0_89, %c0_90] : memref<2x32x128xbf16, #tpu.memory_space<vmem>>, vector<1x32x128xbf16>
    %248 = vector.shape_cast %247 : vector<1x32x128xbf16> to vector<32x128xbf16>
    %cst_91 = arith.constant dense<0.000000e+00> : vector<8x128xf32>
    %249 = tpu.matmul %246, %248, %cst_91 {dimension_numbers = #tpu.dot_dimension_numbers<[1], [0], [0], [1], [0, 0, 1, 1], [], []>} : vector<8x32xbf16>, vector<32x128xbf16>, vector<8x128xf32> -> vector<8x128xf32>
    %c1_92 = arith.constant 1 : index
    %c0_93 = arith.constant 0 : index
    %250 = vector.load %arg12[%c1_92, %c0_93] : memref<2x128xf32, #tpu.memory_space<vmem>>, vector<1x128xf32>
    %251 = vector.shape_cast %250 : vector<1x128xf32> to vector<128xf32>
    %252 = vector.shape_cast %251 : vector<128xf32> to vector<1x128xf32>
    %253 = vector.broadcast %252 : vector<1x128xf32> to vector<8x128xf32>
    %254 = arith.addf %249, %253 : vector<8x128xf32>
    %255 = arith.mulf %254, %254 : vector<8x128xf32>
    %256 = arith.mulf %254, %255 : vector<8x128xf32>
    %cst_94 = arith.constant 4.471500e-02 : f32
    %257 = vector.broadcast %cst_94 : f32 to vector<8x128xf32>
    %258 = arith.mulf %257, %256 : vector<8x128xf32>
    %259 = arith.addf %254, %258 : vector<8x128xf32>
    %cst_95 = arith.constant 0.797884583 : f32
    %260 = vector.broadcast %cst_95 : f32 to vector<8x128xf32>
    %261 = arith.mulf %260, %259 : vector<8x128xf32>
    %262 = math.tanh %261 : vector<8x128xf32>
    %cst_96 = arith.constant 1.000000e+00 : f32
    %263 = vector.broadcast %cst_96 : f32 to vector<8x128xf32>
    %264 = arith.addf %263, %262 : vector<8x128xf32>
    %cst_97 = arith.constant 5.000000e-01 : f32
    %265 = vector.broadcast %cst_97 : f32 to vector<8x128xf32>
    %266 = arith.mulf %265, %264 : vector<8x128xf32>
    %267 = arith.mulf %254, %266 : vector<8x128xf32>
    %268 = arith.truncf %267 : vector<8x128xf32> to vector<8x128xbf16>
    %c1_98 = arith.constant 1 : index
    %c0_99 = arith.constant 0 : index
    %c0_100 = arith.constant 0 : index
    %269 = vector.load %arg13[%c1_98, %c0_99, %c0_100] : memref<2x128x32xbf16, #tpu.memory_space<vmem>>, vector<1x128x32xbf16>
    %270 = vector.shape_cast %269 : vector<1x128x32xbf16> to vector<128x32xbf16>
    %cst_101 = arith.constant dense<0.000000e+00> : vector<8x32xf32>
    %271 = tpu.matmul %268, %270, %cst_101 {dimension_numbers = #tpu.dot_dimension_numbers<[1], [0], [0], [1], [0, 0, 1, 1], [], []>} : vector<8x128xbf16>, vector<128x32xbf16>, vector<8x32xf32> -> vector<8x32xf32>
    %272 = arith.addf %217, %271 : vector<8x32xf32>
    %c1_102 = arith.constant 1 : index
    %c0_103 = arith.constant 0 : index
    %273 = vector.load %arg14[%c1_102, %c0_103] : memref<2x32xf32, #tpu.memory_space<vmem>>, vector<1x32xf32>
    %274 = vector.shape_cast %273 : vector<1x32xf32> to vector<32xf32>
    %275 = vector.shape_cast %274 : vector<32xf32> to vector<1x32xf32>
    %276 = vector.broadcast %275 : vector<1x32xf32> to vector<8x32xf32>
    %277 = arith.addf %272, %276 : vector<8x32xf32>
    %c0_104 = arith.constant 0 : index
    %c0_105 = arith.constant 0 : index
    %278 = vector.load %arg15[%c0_104, %c0_105] : memref<1x32xf32, #tpu.memory_space<vmem>>, vector<1x32xf32>
    %c0_106 = arith.constant 0 : index
    %c0_107 = arith.constant 0 : index
    %279 = vector.load %arg16[%c0_106, %c0_107] : memref<1x32xf32, #tpu.memory_space<vmem>>, vector<1x32xf32>
    %cst_108 = arith.constant dense<0.000000e+00> : vector<8xf32>
    %280 = vector.multi_reduction <add>, %277, %cst_108 [1] : vector<8x32xf32> to vector<8xf32>
    %281 = vector.shape_cast %280 : vector<8xf32> to vector<8x1xf32>
    %cst_109 = arith.constant 3.200000e+01 : f32
    %282 = vector.broadcast %cst_109 : f32 to vector<8x1xf32>
    %283 = arith.divf %281, %282 : vector<8x1xf32>
    %284 = vector.broadcast %283 : vector<8x1xf32> to vector<8x32xf32>
    %285 = arith.subf %277, %284 : vector<8x32xf32>
    %286 = arith.mulf %285, %285 : vector<8x32xf32>
    %cst_110 = arith.constant dense<0.000000e+00> : vector<8xf32>
    %287 = vector.multi_reduction <add>, %286, %cst_110 [1] : vector<8x32xf32> to vector<8xf32>
    %288 = vector.shape_cast %287 : vector<8xf32> to vector<8x1xf32>
    %cst_111 = arith.constant 3.200000e+01 : f32
    %289 = vector.broadcast %cst_111 : f32 to vector<8x1xf32>
    %290 = arith.divf %288, %289 : vector<8x1xf32>
    %291 = vector.broadcast %283 : vector<8x1xf32> to vector<8x32xf32>
    %292 = arith.subf %277, %291 : vector<8x32xf32>
    %cst_112 = arith.constant 9.99999974E-6 : f32
    %293 = vector.broadcast %cst_112 : f32 to vector<8x1xf32>
    %294 = arith.addf %290, %293 : vector<8x1xf32>
    %295 = math.rsqrt %294 : vector<8x1xf32>
    %296 = vector.broadcast %295 : vector<8x1xf32> to vector<8x32xf32>
    %297 = arith.mulf %292, %296 : vector<8x32xf32>
    %298 = vector.broadcast %278 : vector<1x32xf32> to vector<8x32xf32>
    %299 = arith.mulf %297, %298 : vector<8x32xf32>
    %300 = vector.broadcast %279 : vector<1x32xf32> to vector<8x32xf32>
    %301 = arith.addf %299, %300 : vector<8x32xf32>
    %302 = arith.truncf %301 : vector<8x32xf32> to vector<8x32xbf16>
    %c0_113 = arith.constant 0 : index
    %c0_114 = arith.constant 0 : index
    %303 = vector.load %arg17[%c0_113, %c0_114] : memref<32x128xbf16, #tpu.memory_space<vmem>>, vector<32x128xbf16>
    %cst_115 = arith.constant dense<0.000000e+00> : vector<8x128xf32>
    %304 = tpu.matmul %302, %303, %cst_115 {dimension_numbers = #tpu.dot_dimension_numbers<[1], [0], [0], [1], [0, 0, 1, 1], [], []>} : vector<8x32xbf16>, vector<32x128xbf16>, vector<8x128xf32> -> vector<8x128xf32>
    %c0_116 = arith.constant 0 : index
    %c0_117 = arith.constant 0 : index
    %305 = vector.load %arg18[%c0_116, %c0_117] : memref<1x128xf32, #tpu.memory_space<vmem>>, vector<1x128xf32>
    %306 = vector.broadcast %305 : vector<1x128xf32> to vector<8x128xf32>
    %307 = arith.addf %304, %306 : vector<8x128xf32>
    %c0_118 = arith.constant 0 : index
    %c0_119 = arith.constant 0 : index
    %308 = vector.load %arg19[%c0_118, %c0_119] : memref<8x128xf32, #tpu.memory_space<vmem>>, vector<8x128xf32>
    tpu.vector_store %arg19[%c0_118, %c0_119], %307 {strides = array<i32>} : memref<8x128xf32, #tpu.memory_space<vmem>>, vector<8x128xf32>,
    return
  }
  func.func @transform_0(%arg0: i32) -> (i32, i32) {
    %c0_i32 = arith.constant 0 : i32
    %c0_i32_0 = arith.constant 0 : i32
    return %arg0, %c0_i32 : i32, i32
  }
  func.func @transform_1(%arg0: i32) -> (i32, i32, i32) {
    %c0_i32 = arith.constant 0 : i32
    %c0_i32_0 = arith.constant 0 : i32
    %c0_i32_1 = arith.constant 0 : i32
    %c0_i32_2 = arith.constant 0 : i32
    return %c0_i32, %c0_i32_0, %c0_i32_1 : i32, i32, i32
  }
  func.func @transform_2(%arg0: i32) -> (i32, i32) {
    %c0_i32 = arith.constant 0 : i32
    %c0_i32_0 = arith.constant 0 : i32
    %c0_i32_1 = arith.constant 0 : i32
    return %c0_i32, %c0_i32_0 : i32, i32
  }
  func.func @transform_3(%arg0: i32) -> (i32, i32) {
    %c0_i32 = arith.constant 0 : i32
    %c0_i32_0 = arith.constant 0 : i32
    %c0_i32_1 = arith.constant 0 : i32
    return %c0_i32, %c0_i32_0 : i32, i32
  }
  func.func @transform_4(%arg0: i32) -> (i32, i32, i32) {
    %c0_i32 = arith.constant 0 : i32
    %c0_i32_0 = arith.constant 0 : i32
    %c0_i32_1 = arith.constant 0 : i32
    %c0_i32_2 = arith.constant 0 : i32
    return %c0_i32, %c0_i32_0, %c0_i32_1 : i32, i32, i32
  }
  func.func @transform_5(%arg0: i32) -> (i32, i32) {
    %c0_i32 = arith.constant 0 : i32
    %c0_i32_0 = arith.constant 0 : i32
    %c0_i32_1 = arith.constant 0 : i32
    return %c0_i32, %c0_i32_0 : i32, i32
  }
  func.func @transform_6(%arg0: i32) -> (i32, i32, i32) {
    %c0_i32 = arith.constant 0 : i32
    %c0_i32_0 = arith.constant 0 : i32
    %c0_i32_1 = arith.constant 0 : i32
    %c0_i32_2 = arith.constant 0 : i32
    return %c0_i32, %c0_i32_0, %c0_i32_1 : i32, i32, i32
  }
  func.func @transform_7(%arg0: i32) -> (i32, i32) {
    %c0_i32 = arith.constant 0 : i32
    %c0_i32_0 = arith.constant 0 : i32
    %c0_i32_1 = arith.constant 0 : i32
    return %c0_i32, %c0_i32_0 : i32, i32
  }
  func.func @transform_8(%arg0: i32) -> (i32, i32) {
    %c0_i32 = arith.constant 0 : i32
    %c0_i32_0 = arith.constant 0 : i32
    %c0_i32_1 = arith.constant 0 : i32
    return %c0_i32, %c0_i32_0 : i32, i32
  }
  func.func @transform_9(%arg0: i32) -> (i32, i32) {
    %c0_i32 = arith.constant 0 : i32
    %c0_i32_0 = arith.constant 0 : i32
    %c0_i32_1 = arith.constant 0 : i32
    return %c0_i32, %c0_i32_0 : i32, i32
  }
  func.func @transform_10(%arg0: i32) -> (i32, i32, i32) {
    %c0_i32 = arith.constant 0 : i32
    %c0_i32_0 = arith.constant 0 : i32
    %c0_i32_1 = arith.constant 0 : i32
    %c0_i32_2 = arith.constant 0 : i32
    return %c0_i32, %c0_i32_0, %c0_i32_1 : i32, i32, i32
  }
  func.func @transform_11(%arg0: i32) -> (i32, i32) {
    %c0_i32 = arith.constant 0 : i32
    %c0_i32_0 = arith.constant 0 : i32
    %c0_i32_1 = arith.constant 0 : i32
    return %c0_i32, %c0_i32_0 : i32, i32
  }
  func.func @transform_12(%arg0: i32) -> (i32, i32, i32) {
    %c0_i32 = arith.constant 0 : i32
    %c0_i32_0 = arith.constant 0 : i32
    %c0_i32_1 = arith.constant 0 : i32
    %c0_i32_2 = arith.constant 0 : i32
    return %c0_i32, %c0_i32_0, %c0_i32_1 : i32, i32, i32
  }
  func.func @transform_13(%arg0: i32) -> (i32, i32) {
    %c0_i32 = arith.constant 0 : i32
    %c0_i32_0 = arith.constant 0 : i32
    %c0_i32_1 = arith.constant 0 : i32
    return %c0_i32, %c0_i32_0 : i32, i32
  }
  func.func @transform_14(%arg0: i32) -> (i32, i32) {
    %c0_i32 = arith.constant 0 : i32
    %c0_i32_0 = arith.constant 0 : i32
    %c0_i32_1 = arith.constant 0 : i32
    return %c0_i32, %c0_i32_0 : i32, i32
  }
  func.func @transform_15(%arg0: i32) -> (i32, i32) {
    %c0_i32 = arith.constant 0 : i32
    %c0_i32_0 = arith.constant 0 : i32
    %c0_i32_1 = arith.constant 0 : i32
    return %c0_i32, %c0_i32_0 : i32, i32
  }
  func.func @transform_16(%arg0: i32) -> (i32, i32) {
    %c0_i32 = arith.constant 0 : i32
    %c0_i32_0 = arith.constant 0 : i32
    %c0_i32_1 = arith.constant 0 : i32
    return %c0_i32, %c0_i32_0 : i32, i32
  }
  func.func @transform_17(%arg0: i32) -> (i32, i32) {
    %c0_i32 = arith.constant 0 : i32
    %c0_i32_0 = arith.constant 0 : i32
    %c0_i32_1 = arith.constant 0 : i32
    return %c0_i32, %c0_i32_0 : i32, i32
  }
  func.func @transform_18(%arg0: i32) -> (i32, i32) {
    %c0_i32 = arith.constant 0 : i32
    %c0_i32_0 = arith.constant 0 : i32
    return %arg0, %c0_i32 : i32, i32
  }
}

</mosaic_0001>

<bundles_post_ra>
// kernel: tpu_custom_call.1
= control target key start
LH: loop header
LB: loop body
LE: loop exit
PB: predicated region body
PF: predicated region fallthrough
CT: control target
= control target key end

     0   :  { %s4925_s0 = inlined_call_operand.vmem [shape: f32[16,32], index: 0, kind: input, shape index: {}]   ;;  %s4926_s1 = inlined_call_operand.vmem [shape: f32[1,8,8], index: 1, kind: input, shape index: {}]   ;;  %s4927_s2 = inlined_call_operand.vmem [shape: f32[2,32], index: 2, kind: input, shape index: {}]   ;;  %s4928_s3 = inlined_call_operand.vmem [shape: f32[2,32], index: 3, kind: input, shape index: {}]   ;;  %s4929_s4 = inlined_call_operand.vmem [shape: bf16[2,32,96], index: 4, kind: input, shape index: {}]   ;;  %s4930_s5 = inlined_call_operand.vmem [shape: f32[2,96], index: 5, kind: input, shape index: {}]   ;;  %s4931_s6 = inlined_call_operand.vmem [shape: bf16[2,32,32], index: 6, kind: input, shape index: {}]   ;;  %s4932_s7 = inlined_call_operand.vmem [shape: f32[2,32], index: 7, kind: input, shape index: {}]   ;;  %s4933_s8 = inlined_call_operand.vmem [shape: f32[2,32], index: 8, kind: input, shape index: {}]   ;;  %s4934_s9 = inlined_call_operand.vmem [shape: f32[2,32], index: 9, kind: input, shape index: {}]   ;;  %s4935_s10 = inlined_call_operand.vmem [shape: bf16[2,32,128], index: 10, kind: input, shape index: {}]   ;;  %s4936_s11 = inlined_call_operand.vmem [shape: f32[2,128], index: 11, kind: input, shape index: {}]   ;;  %s4937_s12 = inlined_call_operand.vmem [shape: bf16[2,128,32], index: 12, kind: input, shape index: {}]   ;;  %s4938_s13 = inlined_call_operand.vmem [shape: f32[2,32], index: 13, kind: input, shape index: {}]   ;;  %s4939_s14 = inlined_call_operand.vmem [shape: f32[1,32], index: 14, kind: input, shape index: {}]   ;;  %s4940_s15 = inlined_call_operand.vmem [shape: f32[1,32], index: 15, kind: input, shape index: {}]   ;;  %s4941_s16 = inlined_call_operand.vmem [shape: bf16[32,128], index: 16, kind: input, shape index: {}]   ;;  %s4942_s17 = inlined_call_operand.vmem [shape: f32[1,128], index: 17, kind: input, shape index: {}]   ;;  %s4943_s18 = inlined_call_operand.hbm [shape: f32[16,128], index: 18, kind: output, shape index: {}]  }
   0x1   :  { %4961 = sst [smem:[#allocation8_spill]] %s4925_s0 }
   0x2   :  { %4962 = sst [smem:[#allocation9_spill]] %s4926_s1 }
   0x3   :  { %4963 = sst [smem:[#allocation10_spill]] %s4927_s2 }
   0x4   :  { %4964 = sst [smem:[#allocation11_spill]] %s4928_s3 }
   0x5   :  { %4965 = sst [smem:[#allocation12_spill]] %s4929_s4 }
   0x6   :  { %4966 = sst [smem:[#allocation13_spill]] %s4930_s5 }
   0x7   :  { %23 = vsyncpa [#allocation3], 0 }
   0x8   :  { %25 = vsyncpa [#allocation3 + $0x1], 0  ;;  %s4234_s27 = smov 0   ;;  %s4236_s28 = smov 0  }
   0x9   :  { %s4238_s29 = smov 0   ;;  %s4240_s30 = smov 0  }
   0xa LB: > { %4967 = sst [smem:[#allocation5_spill]] %s4120_s29  ;;  %s4255_s0 = sadd.s32 4294967295, %s4124_s30   ;;  %s4124_s30 = sphi %s4240_s30, %s4986_s30   ;;  %s4120_s29 = sphi %s4238_s29, %s4988_s29   ;;  %s4116_s28 = sphi %s4236_s28, %s4990_s28   ;;  %s4112_s27 = sphi %s4234_s27, %s4989_s27  }
   0xb   : > { %s3548_s19 = sadd.s32 4294967294, %s4124_s30   ;;  %s4259_s1 = sadd.s32 1, %s4124_s30  }
   0xc   : > { %4968 = sst [smem:[#allocation6_spill]] %s4259_s1  ;;  %s421_s20 = sadd.s32 1, %s4120_s29 }
   0xd   : > { %s418_s21 = ssub.s32 %s4124_s30, %s4259_s1  ;;  %p431_p0 = scmp.ne.s32.totalorder %s4120_s29, %s4116_s28 }
   0xe   : > { %p419_p1 = scmp.eq.s32.totalorder %s418_s21, 0  ;;  %p432_p2 = scmp.eq.s32.totalorder %s4255_s0, 1 }
   0xf   : > { %p437_p3 = scmp.ne.s32.totalorder %s4116_s28, %s4112_s27  ;;  %p438_p4 = scmp.eq.s32.totalorder %s3548_s19, 1 }
  0x10   : > { %s4270_s22 = scalar_select %p419_p1, %s4120_s29, %s421_s20  }
  0x11   : > { %p4272_p5 = por %p432_p2, %p431_p0  ;;  %p4276_p6 = por %p438_p4, %p437_p3 }
  0x12   : > { %4969 = sst [smem:[#allocation7_spill]] %s4270_s22  ;;  %p3551_p7 = scmp.ge.s32.totalorder %s4124_s30, 1 }
  0x13   : > { %p514_p8 = scmp.lt.s32.totalorder %s4124_s30, 3 }
  0x15   : > { %p515_p9 = pnand %p3551_p7, %p514_p8 }
  0x16   : > { %p567_p10 = scmp.lt.s32.totalorder (!%p515_p9), %s4255_s0, 1  ;;  %s4972_s20 = sld [smem:[#allocation8_spill]] (!%p515_p9) }
  0x17   : > { %518 = sbr.rel (%p515_p9) target bundleno = 5752 (0x1678), region = 92  ;;  %s4973_s4 = sld [smem:[#allocation12_spill]] (!%p515_p9) }
  0x18   : > { %s4975_s3 = sld [smem:[#allocation11_spill]] (!%p515_p9)  ;;  %s4949_s22 = smov (!%p515_p9), 104  }
  0x19   : > { %s4976_s5 = sld [smem:[#allocation13_spill]] (!%p515_p9)  ;;  %s4954_s19 = smov (!%p515_p9), 120  }
  0x1a   : > { %s4978_s1 = smov (!%p515_p9), 112   ;;  %s4979_s26 = smov (!%p515_p9), 120  }
  0x1c   : > { %s568_s24 = scalar_select %p567_p10, %s4255_s0, 1  ;;  %vm576_vm0 = vcmask 261120   ;;  %v4126_v8 = vmov 0.0   ;;  %vm4127_vm1 = vmmov 0   ;;  %v4132_v31 = vmov 1983009808  }
  0x1d   : > { %v3988_v7 = vld [vmem:[%s4973_s4 + $0x8] sm:$0xff]   ;;  %3745 = vmatprep.subr.bf16.mxu1 %v4126_v8  ;;  %3749 = vmatprep.mubr.msk.bf16.mxu1 %vm4127_vm1, %v4126_v8  ;;  %v3989_v9 = vld [vmem:[%s4973_s4] sm:$0xff]   ;;  %v680_v32 = vunpack.c.l.s4 %v4132_v31  ;;  %v682_v33 = vlaneseq  ;;  %v4133_v35 = vmov 1934713408   ;;  %vm1128_vm2 = vcmask 64512  }
  0x1e   : > { %s3553_s25 = sshll.u32 %s568_s24, 3  ;;  %3746 = vmatpush3.bf16.msra.mxu1 %v3988_v7  ;;  %3759 = vmatprep.subr.bf16.mxu0 %v4126_v8  ;;  %v3555_v16 = vld [vmem:[%s4975_s3] ss:$0 sm:$0xff]  ;;  %s4945_s24 = smov 96   ;;  %v712_v36 = vunpack.c.l.s4 %v4133_v35  ;;  %vm1364_vm3 = vcmask 1043456   ;;  %vm1695_vm4 = vcmask 130048  }
  0x1f   : > { %s570_s21 = scalar_lea.vmem %s4972_s20, %s3553_s25  ;;  %3747 = vmatprep.subr.bf16.mxu1 %v4126_v8  ;;  %3761 = vmatprep.mubr.msk.bf16.mxu0 %vm4127_vm1, %v4126_v8  ;;  %s4974_s20 = sld [smem:[#allocation10_spill]]  ;;  %v3556_v20 = vld [vmem:[%s4976_s5] ss:$0 sm:$0xff]  ;;  %v681_v37 = vunpack.c.0.s8 %v680_v32  ;;  %v683_v38 = vshrl.u32 %v682_v33, 7  ;;  %vm1697_vm5 = vcmask 195584  }
  0x20   : > { %v4287_v0 = vld [vmem:[%s570_s21] sm:$0xff]  ;;  %s4956_s21 = smov 112   ;;  %v713_v40 = vunpack.c.0.s8 %v712_v36  ;;  %s4951_s25 = smov 24  }
  0x21   : > { %v577_v1 = vsel %vm576_vm0, %v4287_v0, 0.0  ;;  %v4350_v41 = vsub.s32 %v681_v37, %v683_v38 }
  0x22   : > { %578 = vadd.xlane.f32.xlu0 %v577_v1  ;;  %3748 = vmatpush3.bf16.msra.mxu1 %v3989_v9  ;;  %v4352_v47 = vsub.s32 %v713_v40, %v683_v38 }
  0x23   : > { %3753 = vmatprep.subr.bf16.mxu1 %v4126_v8 }
  0x25   : > { %v3554_v14 = vld [vmem:[%s4974_s20] ss:$0 sm:$0xff] }
  0xab   : > { %v579_v2 = vpop.xlane.xlu0 %578 }
  0xac   : > { %v581_v3 = vmul.f32 0.03125, %v579_v2 }
  0xae   : > { %v582_v4 = vsub.f32 %v4287_v0, %v581_v3 }
  0xb0   : > { %v583_v5 = vmul.f32 %v582_v4, %v582_v4 }
  0xb2   : > { %v584_v6 = vsel %vm576_vm0, %v583_v5, 0.0 }
  0xb3   : > { %585 = vadd.xlane.f32.xlu0 %v584_v6 }
 0x13c   : > { %v586_v10 = vpop.xlane.xlu0 %585 }
 0x13d   : > { %v587_v11 = vmul.f32 0.03125, %v586_v10 }
 0x13f   : > { %v588_v12 = vadd.f32 1e-05, %v587_v11 }
 0x141   : > { %4018 = vrsqrt.f32 %v588_v12 }
 0x14e   : > { %v4019_v13 = vpop.eup %4018 }
 0x14f   : > { %v590_v15 = vmul.f32 %v4019_v13, %v582_v4 }
 0x151   : > { %v595_v17 = vmul.f32 %v3554_v14, %v590_v15 }
 0x153   : > { %v600_v18 = vadd.f32 %v3555_v16, %v595_v17 }
 0x155   : > { %v601_v19 = vpack.c.bf16 %v600_v18, %v600_v18 }
 0x157   : > { %3750 = vmatmul.mubr.msk.bf16.vlgmr.msra.gmra.mxu1 %vm576_vm0, %v601_v19 }
 0x158   : > { %3755 = vmatprep.mubr.msk.bf16.mxu1 %vm4127_vm1, %v4126_v8 }
 0x217   : > { %v660_v21 = vpop.f32.mrf.mxu1 }
 0x218   : > { %v4319_v22 = vadd.f32 %v3556_v20, %v660_v21 }
 0x219   : > { %v3751_v23 = vpop.f32.mrf.mxu1 }
 0x21a   : > { %822 = vrot.lane.b32.xlu0 %v4319_v22, %s4949_s22  ;;  %818 = vrot.lane.b32.xlu1 %v4319_v22, %s4954_s19  ;;  %v4326_v25 = vmul.f32 0.35355338, %v4319_v22 }
 0x21b   : > { %v663_v24 = vpop.f32.mrf.mxu1 }
 0x21d   : > { %v3752_v26 = vpop.f32.mrf.mxu1 }
 0x21e   : > { %820 = vrot.lane.b32.xlu1 %v4319_v22, %s4956_s21  ;;  %674 = vrot.lane.b32.xlu0 %v4326_v25, %s4949_s22  ;;  %s4953_s22 = smov 16  }
 0x222   : > { %824 = vrot.lane.b32.xlu1 %v4319_v22, %s4945_s24 }
 0x28c   : > { %v4334_v27 = vpop.permute.xlu1 %818  ;;  %v4342_v29 = vpop.permute.xlu0 %822 }
 0x28d   : > { %826 = vrot.lane.b32.xlu1 %v4334_v27, %s4945_s24 }
 0x290   : > { %v4338_v28 = vpop.permute.xlu1 %820  ;;  %v675_v57 = vpop.permute.xlu0 %674 }
 0x291   : > { %828 = vrot.lane.b32.xlu1 %v4338_v28, %s4945_s24 }
 0x294   : > { %v825_v30 = vpop.permute.xlu1 %824 }
 0x295   : > { %830 = vrot.lane.b32.xlu1 %v4342_v29, %s4945_s24  ;;  %s4977_s24 = sld [smem:[#allocation9_spill]] }
 0x299   : > { %668 = vrot.lane.b32.xlu1 %v4326_v25, %s4954_s19  ;;  %s4982_s19 = smov 64  }
 0x29d   : > { %671 = vrot.lane.b32.xlu1 %v4326_v25, %s4956_s21 }
 0x2ff   : > { %v827_v34 = vpop.permute.xlu1 %826 }
 0x303   : > { %v829_v39 = vpop.permute.xlu1 %828 }
 0x304   : > { %v836_v42 = vcombine.low %v825_v30, %v829_v39  ;;  %v837_v43 = vcombine.high %v825_v30, %v829_v39 }
 0x306   : > { %v844_v48 = vrot.slane %v836_v42, %v4350_v41  ;;  %v851_v49 = vrot.slane %v837_v43, %v4350_v41 }
 0x307   : > { %v831_v44 = vpop.permute.xlu1 %830 }
 0x308   : > { %v852_v45 = vcombine.low %v827_v34, %v831_v44  ;;  %v853_v46 = vcombine.high %v827_v34, %v831_v44 }
 0x30a   : > { %v860_v50 = vrot.slane %v852_v45, %v4350_v41  ;;  %v867_v51 = vrot.slane %v853_v46, %v4350_v41 }
 0x30b   : > { %v669_v52 = vpop.permute.xlu1 %668 }
 0x30c   : > { %v868_v53 = vcombine.low %v844_v48, %v860_v50  ;;  %v869_v54 = vcombine.high %v844_v48, %v860_v50  ;;  %v884_v55 = vcombine.low %v851_v49, %v867_v51  ;;  %v885_v56 = vcombine.high %v851_v49, %v867_v51 }
 0x30d   : > { %v693_v62 = vcombine.low %v669_v52, %v675_v57  ;;  %v694_v63 = vcombine.high %v669_v52, %v675_v57 }
 0x30e   : > { %v876_v58 = vrot.slane %v868_v53, %v4352_v47  ;;  %v883_v59 = vrot.slane %v869_v54, %v4352_v47  ;;  %v892_v60 = vrot.slane %v884_v55, %v4352_v47  ;;  %v899_v61 = vrot.slane %v885_v56, %v4352_v47 }
 0x30f   : > { %v672_v1 = vpop.permute.xlu1 %671  ;;  %v701_v13 = vrot.slane %v693_v62, %v4350_v41  ;;  %v708_v14 = vrot.slane %v694_v63, %v4350_v41 }
 0x310   : > { %v904_v2 = vcombine.low %v876_v58, %v883_v59  ;;  %v3562_v3 = vcombine.high %v876_v58, %v883_v59  ;;  %v920_v4 = vcombine.low %v892_v60, %v899_v61  ;;  %v3563_v5 = vcombine.high %v892_v60, %v899_v61 }
 0x311   : > { %v677_v6 = vcombine.low %v4326_v25, %v672_v1  ;;  %v678_v7 = vcombine.high %v4326_v25, %v672_v1 }
 0x312   : > { %v911_v9 = vrot.slane %v904_v2, %v4350_v41  ;;  %v919_v10 = vrot.slane %v3562_v3, %v4350_v41  ;;  %v927_v11 = vrot.slane %v920_v4, %v4350_v41  ;;  %v935_v12 = vrot.slane %v3563_v5, %v4350_v41 }
 0x313   : > { %v685_v15 = vrot.slane %v677_v6, %v4350_v41  ;;  %v692_v16 = vrot.slane %v678_v7, %v4350_v41 }
 0x314   : > { %v936_v17 = vcombine.low %v911_v9, %v919_v10  ;;  %v952_v18 = vcombine.low %v927_v11, %v935_v12  ;;  %v937_v19 = vcombine.high %v911_v9, %v919_v10  ;;  %v953_v20 = vcombine.high %v927_v11, %v935_v12 }
 0x315   : > { %v709_v21 = vcombine.low %v685_v15, %v701_v13  ;;  %v710_v23 = vcombine.high %v685_v15, %v701_v13  ;;  %v725_v24 = vcombine.low %v692_v16, %v708_v14  ;;  %v726_v25 = vcombine.high %v692_v16, %v708_v14  ;;  %v4411_v13 = vld [vmem:[%s4977_s24] sm:$0xff]  ;;  %s4947_s24 = smov 64  }
 0x316   : > { %v944_v26 = vrot.slane %v936_v17, %v4352_v47  ;;  %v960_v30 = vrot.slane %v952_v18, %v4352_v47  ;;  %v951_v37 = vrot.slane %v937_v19, %v4352_v47  ;;  %v967_v38 = vrot.slane %v953_v20, %v4352_v47 }
 0x317   : > { %v717_v31 = vrot.slane %v709_v21, %v4352_v47  ;;  %v724_v32 = vrot.slane %v710_v23, %v4352_v47  ;;  %v733_v33 = vrot.slane %v725_v24, %v4352_v47  ;;  %v740_v34 = vrot.slane %v726_v25, %v4352_v47 }
 0x318   : > { %v968_v35 = vcombine.low %v944_v26, %v960_v30  ;;  %v969_v36 = vcombine.high %v944_v26, %v960_v30  ;;  %v970_v55 = vcombine.low %v951_v37, %v967_v38  ;;  %v971_v56 = vcombine.high %v951_v37, %v967_v38 }
 0x319   : > { %v745_v39 = vcombine.low %v717_v31, %v724_v32  ;;  %v3560_v40 = vcombine.high %v717_v31, %v724_v32  ;;  %v761_v42 = vcombine.low %v733_v33, %v740_v34  ;;  %v3561_v43 = vcombine.high %v733_v33, %v740_v34 }
 0x31a   : > { %v972_v44 = vpack.c.bf16 %v968_v35, %v968_v35  ;;  %v973_v45 = vpack.c.bf16 %v969_v36, %v969_v36  ;;  %v974_v63 = vpack.c.bf16 %v970_v55, %v970_v55  ;;  %v975_v1 = vpack.c.bf16 %v971_v56, %v971_v56 }
 0x31b   : > { %v752_v46 = vrot.slane %v745_v39, %v4350_v41  ;;  %v760_v48 = vrot.slane %v3560_v40, %v4350_v41  ;;  %v768_v49 = vrot.slane %v761_v42, %v4350_v41  ;;  %v776_v50 = vrot.slane %v3561_v43, %v4350_v41 }
 0x31c   : > { %v1133_v51 = vsel %vm1128_vm2, %v972_v44, 0  ;;  %v1179_v52 = vsel %vm1128_vm2, %v973_v45, 0  ;;  %v1225_v6 = vsel %vm1128_vm2, %v974_v63, 0  ;;  %v1271_v7 = vsel %vm1128_vm2, %v975_v1, 0 }
 0x31d   : > { %v777_v53 = vcombine.low %v752_v46, %v760_v48  ;;  %v793_v54 = vcombine.low %v768_v49, %v776_v50  ;;  %3754 = vmatpush3.bf16.xpose.msra.mxu1 %v1133_v51  ;;  %3760 = vmatpush3.bf16.xpose.msra.mxu0 %v1179_v52  ;;  %v778_v57 = vcombine.high %v752_v46, %v760_v48 }
 0x31e   : > { %3765 = vmatprep.subr.bf16.mxu1 %v4126_v8  ;;  %v794_v58 = vcombine.high %v768_v49, %v776_v50  ;;  %3771 = vmatprep.subr.bf16.mxu0 %v4126_v8 }
 0x31f   : > { %v785_v59 = vrot.slane %v777_v53, %v4352_v47  ;;  %v801_v60 = vrot.slane %v793_v54, %v4352_v47  ;;  %v792_v4 = vrot.slane %v778_v57, %v4352_v47 }
 0x320   : > { %v808_v5 = vrot.slane %v794_v58, %v4352_v47 }
 0x321   : > { %v809_v61 = vcombine.low %v785_v59, %v801_v60  ;;  %v810_v62 = vcombine.high %v785_v59, %v801_v60 }
 0x322   : > { %v811_v9 = vcombine.low %v792_v4, %v808_v5  ;;  %v812_v10 = vcombine.high %v792_v4, %v808_v5 }
 0x323   : > { %v813_v2 = vpack.c.bf16 %v809_v61, %v809_v61  ;;  %v814_v3 = vpack.c.bf16 %v810_v62, %v810_v62 }
 0x324   : > { %v815_v11 = vpack.c.bf16 %v811_v9, %v811_v9  ;;  %v816_v12 = vpack.c.bf16 %v812_v10, %v812_v10 }
 0x325   : > { %3756 = vmatmul.mubr.msk.bf16.vlgmr.msra.gmra.mxu1 %vm1128_vm2, %v813_v2  ;;  %3762 = vmatmul.mubr.msk.bf16.vlgmr.msra.gmra.mxu0 %vm1128_vm2, %v814_v3 }
 0x326   : > { %3766 = vmatpush3.bf16.xpose.msra.mxu1 %v1225_v6  ;;  %3772 = vmatpush3.bf16.xpose.msra.mxu0 %v1271_v7 }
 0x327   : > { %3767 = vmatprep.mubr.msk.bf16.mxu1 %vm4127_vm1, %v4126_v8  ;;  %3773 = vmatprep.mubr.msk.bf16.mxu0 %vm4127_vm1, %v4126_v8 }
 0x328   : > { %3777 = vmatprep.subr.bf16.mxu1 %v4126_v8  ;;  %3783 = vmatprep.subr.bf16.mxu0 %v4126_v8 }
 0x32d   : > { %3768 = vmatmul.mubr.msk.bf16.vlgmr.msra.gmra.mxu1 %vm1128_vm2, %v815_v11  ;;  %3774 = vmatmul.mubr.msk.bf16.vlgmr.msra.gmra.mxu0 %vm1128_vm2, %v816_v12 }
 0x32e   : > { %3779 = vmatprep.mubr.msk.bf16.mxu1 %vm4127_vm1, %v4126_v8  ;;  %3785 = vmatprep.mubr.msk.bf16.mxu0 %vm4127_vm1, %v4126_v8 }
 0x3e5   : > { %v1169_v14 = vpop.f32.mrf.mxu1  ;;  %v1215_v15 = vpop.f32.mrf.mxu0 }
 0x3e6   : > { %v1170_v16 = vadd.f32 %v1169_v14, %v4411_v13  ;;  %v1216_v17 = vadd.f32 %v1215_v15, %v4411_v13 }
 0x3e7   : > { %v3757_v18 = vpop.f32.mrf.mxu1  ;;  %v3763_v19 = vpop.f32.mrf.mxu0 }
 0x3e8   : > { %v1316_v20 = vsel %vm1128_vm2, %v1216_v17, -inf  ;;  %v1313_v21 = vsel %vm1128_vm2, %v1170_v16, -inf }
 0x3e9   : > { %1317 = vmax.xlane.f32.xlu0 %v1316_v20  ;;  %v1218_v23 = vpop.f32.mrf.mxu0  ;;  %1314 = vmax.xlane.f32.xlu1 %v1313_v21  ;;  %v1172_v24 = vpop.f32.mrf.mxu1 }
 0x3eb   : > { %v3758_v25 = vpop.f32.mrf.mxu1  ;;  %v3764_v26 = vpop.f32.mrf.mxu0 }
 0x3ed   : > { %v1261_v30 = vpop.f32.mrf.mxu1  ;;  %v1307_v31 = vpop.f32.mrf.mxu0 }
 0x3ee   : > { %v1262_v32 = vadd.f32 %v1261_v30, %v4411_v13  ;;  %v1308_v33 = vadd.f32 %v1307_v31, %v4411_v13 }
 0x3ef   : > { %v3769_v34 = vpop.f32.mrf.mxu1  ;;  %v3775_v35 = vpop.f32.mrf.mxu0 }
 0x3f0   : > { %v1322_v36 = vsel %vm1128_vm2, %v1308_v33, -inf  ;;  %v1319_v37 = vsel %vm1128_vm2, %v1262_v32, -inf }
 0x3f1   : > { %v1310_v38 = vpop.f32.mrf.mxu0  ;;  %1323 = vmax.xlane.f32.xlu1 %v1322_v36  ;;  %1320 = vmax.xlane.f32.xlu0 %v1319_v37  ;;  %v1264_v39 = vpop.f32.mrf.mxu1 }
 0x3f3   : > { %v3770_v40 = vpop.f32.mrf.mxu1  ;;  %v3776_v42 = vpop.f32.mrf.mxu0 }
 0x402   : > { %978 = vrot.lane.b32.xlu1 %v4334_v27, %s4947_s24 }
 0x407   : > { %976 = vrot.lane.b32.xlu0 %v4319_v22, %s4947_s24 }
 0x472   : > { %v1318_v43 = vpop.xlane.xlu0 %1317  ;;  %v1315_v44 = vpop.xlane.xlu1 %1314 }
 0x473   : > { %v1326_v45 = vsub.f32 %v1216_v17, %v1318_v43  ;;  %v1325_v46 = vsub.f32 %v1170_v16, %v1315_v44 }
 0x475   : > { %v1331_v48 = vmul.f32 1.442695, %v1326_v45  ;;  %v1329_v49 = vmul.f32 1.442695, %v1325_v46 }
 0x477   : > { %4020 = vpow2.f32 %v1331_v48 }
 0x478   : > { %4022 = vpow2.f32 %v1329_v49 }
 0x47a   : > { %v1321_v22 = vpop.xlane.xlu0 %1320  ;;  %v1324_v53 = vpop.xlane.xlu1 %1323 }
 0x47b   : > { %v1327_v54 = vsub.f32 %v1262_v32, %v1321_v22  ;;  %v1328_v55 = vsub.f32 %v1308_v33, %v1324_v53 }
 0x47d   : > { %v1333_v56 = vmul.f32 1.442695, %v1327_v54  ;;  %v1335_v57 = vmul.f32 1.442695, %v1328_v55 }
 0x47e   : > { %v977_v61 = vpop.permute.xlu0 %976 }
 0x47f   : > { %4024 = vpow2.f32 %v1333_v56 }
 0x480   : > { %4026 = vpow2.f32 %v1335_v57 }
 0x484   : > { %v4425_v50 = vpop.eup %4020 }
 0x485   : > { %v4427_v51 = vpop.eup %4022  ;;  %v1340_v52 = vsel %vm1128_vm2, %v4425_v50, 0.0 }
 0x486   : > { %1341 = vadd.xlane.f32.xlu1 %v1340_v52  ;;  %v1337_v27 = vsel %vm1128_vm2, %v4427_v51, 0.0 }
 0x487   : > { %1338 = vadd.xlane.f32.xlu0 %v1337_v27 }
 0x48c   : > { %v4437_v58 = vpop.eup %4024 }
 0x48d   : > { %v4439_v59 = vpop.eup %4026  ;;  %v1343_v60 = vsel %vm1128_vm2, %v4437_v58, 0.0 }
 0x497   : > { %980 = vrot.lane.b32.xlu1 %v4338_v28, %s4947_s24  ;;  %v1346_v28 = vsel %vm1128_vm2, %v4439_v59, 0.0 }
 0x49d   : > { %982 = vrot.lane.b32.xlu0 %v4342_v29, %s4947_s24  ;;  %v979_v29 = vpop.permute.xlu1 %978  ;;  %s4952_s24 = smov 8  }
 0x4bb   : > { %1344 = vadd.xlane.f32.xlu1 %v1343_v60 }
 0x4bc   : > { %1347 = vadd.xlane.f32.xlu0 %v1346_v28 }
 0x50f   : > { %v1342_v62 = vpop.xlane.xlu1 %1341 }
 0x510   : > { %v1339_v63 = vpop.xlane.xlu0 %1338  ;;  %4028 = vrcp.f32 %v1342_v62 }
 0x511   : > { %4030 = vrcp.f32 %v1339_v63 }
 0x513   : > { %v981_v1 = vpop.permute.xlu1 %980 }
 0x514   : > { %v988_v2 = vcombine.low %v977_v61, %v981_v1  ;;  %v989_v3 = vcombine.high %v977_v61, %v981_v1  ;;  %v983_v4 = vpop.permute.xlu0 %982 }
 0x515   : > { %v1004_v5 = vcombine.low %v979_v29, %v983_v4  ;;  %v1005_v6 = vcombine.high %v979_v29, %v983_v4 }
 0x516   : > { %v996_v7 = vrot.slane %v988_v2, %v4350_v41  ;;  %v1003_v9 = vrot.slane %v989_v3, %v4350_v41 }
 0x517   : > { %v1012_v10 = vrot.slane %v1004_v5, %v4350_v41  ;;  %v1019_v11 = vrot.slane %v1005_v6, %v4350_v41 }
 0x519   : > { %v1020_v12 = vcombine.low %v996_v7, %v1012_v10  ;;  %v1021_v14 = vcombine.high %v996_v7, %v1012_v10  ;;  %v1036_v15 = vcombine.low %v1003_v9, %v1019_v11  ;;  %v1037_v16 = vcombine.high %v1003_v9, %v1019_v11 }
 0x51b   : > { %v1028_v17 = vrot.slane %v1020_v12, %v4352_v47  ;;  %v1035_v18 = vrot.slane %v1021_v14, %v4352_v47  ;;  %v1044_v19 = vrot.slane %v1036_v15, %v4352_v47  ;;  %v1051_v20 = vrot.slane %v1037_v16, %v4352_v47 }
 0x51d   : > { %v1056_v21 = vcombine.low %v1028_v17, %v1035_v18  ;;  %v3564_v23 = vcombine.high %v1028_v17, %v1035_v18  ;;  %v1072_v24 = vcombine.low %v1044_v19, %v1051_v20  ;;  %v3565_v25 = vcombine.high %v1044_v19, %v1051_v20  ;;  %v4029_v37 = vpop.eup %4028 }
 0x51e   : > { %v4031_v43 = vpop.eup %4030  ;;  %v1354_v22 = vmul.f32 %v4029_v37, %v4425_v50 }
 0x51f   : > { %v1063_v26 = vrot.slane %v1056_v21, %v4350_v41  ;;  %v1071_v30 = vrot.slane %v3564_v23, %v4350_v41  ;;  %v1079_v31 = vrot.slane %v1072_v24, %v4350_v41  ;;  %v1087_v32 = vrot.slane %v3565_v25, %v4350_v41 }
 0x520   : > { %v1353_v27 = vmul.f32 %v4031_v43, %v4427_v51  ;;  %v1358_v60 = vpack.c.bf16 %v1354_v22, %v1354_v22 }
 0x521   : > { %v1088_v33 = vcombine.low %v1063_v26, %v1071_v30  ;;  %v1104_v34 = vcombine.low %v1079_v31, %v1087_v32  ;;  %v1089_v35 = vcombine.high %v1063_v26, %v1071_v30  ;;  %v1105_v36 = vcombine.high %v1079_v31, %v1087_v32 }
 0x522   : > { %v1357_v57 = vpack.c.bf16 %v1353_v27, %v1353_v27 }
 0x523   : > { %v1096_v38 = vrot.slane %v1088_v33, %v4352_v47  ;;  %v1112_v39 = vrot.slane %v1104_v34, %v4352_v47  ;;  %v1103_v40 = vrot.slane %v1089_v35, %v4352_v47  ;;  %v1119_v42 = vrot.slane %v1105_v36, %v4352_v47  ;;  %v3990_v35 = vld [vmem:[%s4931_s6 + $0x8] sm:$0xff]  }
 0x525   : > { %v1120_v44 = vcombine.low %v1096_v38, %v1112_v39  ;;  %v1121_v45 = vcombine.high %v1096_v38, %v1112_v39  ;;  %v1122_v46 = vcombine.low %v1103_v40, %v1119_v42  ;;  %v1123_v48 = vcombine.high %v1103_v40, %v1119_v42 }
 0x527   : > { %v1124_v49 = vpack.c.bf16 %v1120_v44, %v1120_v44  ;;  %v1125_v52 = vpack.c.bf16 %v1121_v45, %v1121_v45  ;;  %v1126_v55 = vpack.c.bf16 %v1122_v46, %v1122_v46  ;;  %v1127_v56 = vpack.c.bf16 %v1123_v48, %v1123_v48  ;;  %v3991_v46 = vld [vmem:[%s4931_s6] sm:$0xff]  }
 0x529   : > { %v1366_v53 = vsel %vm1364_vm3, %v1124_v49, 0  ;;  %v1412_v54 = vsel %vm1364_vm3, %v1125_v52, 0  ;;  %v1458_v50 = vsel %vm1364_vm3, %v1126_v55, 0  ;;  %v1504_v51 = vsel %vm1364_vm3, %v1127_v56, 0 }
 0x52a   : > { %3778 = vmatpush3.bf16.msra.mxu1 %v1366_v53  ;;  %3784 = vmatpush3.bf16.msra.mxu0 %v1412_v54 }
 0x52b   : > { %3789 = vmatprep.subr.bf16.mxu1 %v4126_v8  ;;  %3795 = vmatprep.subr.bf16.mxu0 %v4126_v8 }
 0x52d   : > { %3780 = vmatmul.mubr.msk.bf16.vlgmr.msra.gmra.mxu1 %vm1128_vm2, %v1357_v57  ;;  %3786 = vmatmul.mubr.msk.bf16.vlgmr.msra.gmra.mxu0 %vm1128_vm2, %v1358_v60 }
 0x52e   : > { %3790 = vmatpush3.bf16.msra.mxu1 %v1458_v50  ;;  %3796 = vmatpush3.bf16.msra.mxu0 %v1504_v51 }
 0x52f   : > { %3791 = vmatprep.mubr.msk.bf16.mxu1 %vm4127_vm1, %v4126_v8  ;;  %3797 = vmatprep.mubr.msk.bf16.mxu0 %vm4127_vm1, %v4126_v8 }
 0x530   : > { %3801 = vmatprep.subr.bf16.mxu1 %v4126_v8  ;;  %3809 = vmatprep.subr.bf16.mxu0 %v4126_v8 }
 0x544   : > { %v1345_v28 = vpop.xlane.xlu1 %1344 }
 0x545   : > { %4032 = vrcp.f32 %v1345_v28  ;;  %v1348_v29 = vpop.xlane.xlu0 %1347 }
 0x546   : > { %4034 = vrcp.f32 %v1348_v29 }
 0x552   : > { %v4033_v61 = vpop.eup %4032 }
 0x553   : > { %v4035_v62 = vpop.eup %4034  ;;  %v1355_v63 = vmul.f32 %v4033_v61, %v4437_v58 }
 0x554   : > { %v1356_v1 = vmul.f32 %v4035_v62, %v4439_v59 }
 0x555   : > { %v1359_v2 = vpack.c.bf16 %v1355_v63, %v1355_v63 }
 0x556   : > { %v1360_v3 = vpack.c.bf16 %v1356_v1, %v1356_v1 }
 0x557   : > { %3792 = vmatmul.mubr.msk.bf16.vlgmr.msra.gmra.mxu1 %vm1128_vm2, %v1359_v2 }
 0x558   : > { %3798 = vmatmul.mubr.msk.bf16.vlgmr.msra.gmra.mxu0 %vm1128_vm2, %v1360_v3  ;;  %3805 = vmatprep.mubr.msk.bf16.mxu1 %vm4127_vm1, %v4126_v8 }
 0x559   : > { %3813 = vmatprep.mubr.msk.bf16.mxu0 %vm4127_vm1, %v4126_v8  ;;  %3802 = vmatpush3.bf16.msra.mxu1 %v3990_v35  ;;  %v3995_v35 = vld [vmem:[%s4937_s12 + $0x30] sm:$0xff]  }
 0x55a   : > { %3803 = vmatprep.subr.bf16.mxu1 %v4126_v8 }
 0x55d   : > { %3804 = vmatpush3.bf16.msra.mxu1 %v3991_v46 }
 0x55e   : > { %3817 = vmatprep.subr.bf16.mxu1 %v4126_v8 }
 0x5ed   : > { %v1402_v4 = vpop.f32.mrf.mxu1  ;;  %v1448_v5 = vpop.f32.mrf.mxu0 }
 0x5ef   : > { %v3781_v6 = vpop.f32.mrf.mxu1  ;;  %v3787_v7 = vpop.f32.mrf.mxu0 }
 0x5f0   : > { %v3579_v7 = vld [vmem:[%s4932_s7] ss:$0 sm:$0xff] }
 0x5f1   : > { %v1405_v9 = vpop.f32.mrf.mxu1  ;;  %v1451_v58 = vpop.f32.mrf.mxu0 }
 0x5f3   : > { %v3782_v10 = vpop.f32.mrf.mxu1  ;;  %v3788_v59 = vpop.f32.mrf.mxu0 }
 0x617   : > { %v1494_v11 = vpop.f32.mrf.mxu1 }
 0x618   : > { %v1546_v12 = vcombine.low %v1402_v4, %v1494_v11  ;;  %v1547_v14 = vcombine.high %v1402_v4, %v1494_v11  ;;  %v1540_v15 = vpop.f32.mrf.mxu0 }
 0x619   : > { %v1562_v16 = vcombine.low %v1448_v5, %v1540_v15  ;;  %v1563_v17 = vcombine.high %v1448_v5, %v1540_v15  ;;  %v3793_v18 = vpop.f32.mrf.mxu1 }
 0x61a   : > { %v1554_v19 = vrot.slane %v1546_v12, %v4350_v41  ;;  %v1561_v20 = vrot.slane %v1547_v14, %v4350_v41  ;;  %v3799_v21 = vpop.f32.mrf.mxu0 }
 0x61b   : > { %v1570_v23 = vrot.slane %v1562_v16, %v4350_v41  ;;  %v1577_v24 = vrot.slane %v1563_v17, %v4350_v41  ;;  %v1497_v25 = vpop.f32.mrf.mxu1 }
 0x61c   : > { %v1543_v26 = vpop.f32.mrf.mxu0  ;;  %v3580_v25 = vld [vmem:[%s4933_s8] ss:$0 sm:$0xff] }
 0x61d   : > { %v1578_v30 = vcombine.low %v1554_v19, %v1570_v23  ;;  %v1579_v31 = vcombine.high %v1554_v19, %v1570_v23  ;;  %v1594_v32 = vcombine.low %v1561_v20, %v1577_v24  ;;  %v1595_v33 = vcombine.high %v1561_v20, %v1577_v24  ;;  %v3794_v34 = vpop.f32.mrf.mxu1  ;;  %v3993_v19 = vld [vmem:[%s4935_s10] sm:$0xff]  }
 0x61e   : > { %v3800_v36 = vpop.f32.mrf.mxu0  ;;  %v3994_v34 = vld [vmem:[%s4937_s12 + $0x38] sm:$0xff]  }
 0x61f   : > { %v1586_v37 = vrot.slane %v1578_v30, %v4352_v47  ;;  %v1593_v38 = vrot.slane %v1579_v31, %v4352_v47  ;;  %v1602_v39 = vrot.slane %v1594_v32, %v4352_v47  ;;  %v1609_v40 = vrot.slane %v1595_v33, %v4352_v47  ;;  %v3581_v30 = vld [vmem:[%s4934_s9] ss:$0 sm:$0xff]  ;;  %v3996_v36 = vld [vmem:[%s4937_s12 + $0x28] sm:$0xff]  }
 0x621   : > { %v1614_v42 = vcombine.low %v1586_v37, %v1593_v38  ;;  %v3574_v43 = vcombine.high %v1586_v37, %v1593_v38  ;;  %v1630_v44 = vcombine.low %v1602_v39, %v1609_v40  ;;  %v3575_v45 = vcombine.high %v1602_v39, %v1609_v40  ;;  %v3997_v37 = vld [vmem:[%s4937_s12 + $0x20] sm:$0xff]   ;;  %v3998_v38 = vld [vmem:[%s4937_s12 + $0x18] sm:$0xff]   ;;  %v3999_v39 = vld [vmem:[%s4937_s12 + $0x10] sm:$0xff]  }
 0x622   : > { %v4000_v40 = vld [vmem:[%s4937_s12 + $0x8] sm:$0xff]  }
 0x623   : > { %v1621_v48 = vrot.slane %v1614_v42, %v4350_v41  ;;  %v1629_v49 = vrot.slane %v3574_v43, %v4350_v41  ;;  %v1637_v52 = vrot.slane %v1630_v44, %v4350_v41  ;;  %v1645_v27 = vrot.slane %v3575_v45, %v4350_v41  ;;  %v4001_v42 = vld [vmem:[%s4937_s12] sm:$0xff]  }
 0x624   : > { %v3582_v43 = vld [vmem:[%s4936_s11] ss:$0 sm:$0xff] }
 0x625   : > { %v1647_v22 = vcombine.high %v1621_v48, %v1629_v49  ;;  %v1663_v53 = vcombine.high %v1637_v52, %v1645_v27  ;;  %v1646_v54 = vcombine.low %v1621_v48, %v1629_v49  ;;  %v1662_v55 = vcombine.low %v1637_v52, %v1645_v27 }
 0x627   : > { %v1661_v56 = vrot.slane %v1647_v22, %v4352_v47  ;;  %v1677_v57 = vrot.slane %v1663_v53, %v4352_v47  ;;  %v1654_v60 = vrot.slane %v1646_v54, %v4352_v47  ;;  %v1670_v50 = vrot.slane %v1662_v55, %v4352_v47 }
 0x629   : > { %v1680_v51 = vcombine.low %v1661_v56, %v1677_v57  ;;  %v1679_v28 = vcombine.high %v1654_v60, %v1670_v50  ;;  %v1678_v29 = vcombine.low %v1654_v60, %v1670_v50  ;;  %v1681_v61 = vcombine.high %v1661_v56, %v1677_v57 }
 0x62b   : > { %1687 = vrot.lane.b32.xlu1 %v1680_v51, %s4953_s22  ;;  %1683 = vrot.lane.b32.xlu0 %v1679_v28, %s4952_s24  ;;  %v3594_v28 = vld [vmem:[%s4938_s13] ss:$0 sm:$0xff]  ;;  %s4980_s22 = smov 104   ;;  %s4981_s24 = smov 96  }
 0x62f   : > { %1691 = vrot.lane.b32.xlu1 %v1681_v61, %s4951_s25 }
 0x69d   : > { %v1688_v62 = vpop.permute.xlu1 %1687  ;;  %v1684_v63 = vpop.permute.xlu0 %1683 }
 0x69e   : > { %v1694_v1 = vsel %vm1128_vm2, %v1678_v29, %v1684_v63 }
 0x69f   : > { %v1696_v3 = vsel %vm1695_vm4, %v1694_v1, %v1688_v62 }
 0x6a1   : > { %v1692_v2 = vpop.permute.xlu1 %1691 }
 0x6a2   : > { %v1698_v4 = vsel %vm1697_vm5, %v1696_v3, %v1692_v2 }
 0x6a3   : > { %v1699_v5 = vpack.c.bf16 %v1698_v4, %v1698_v4 }
 0x6a5   : > { %3806 = vmatmul.mubr.msk.bf16.vlgmr.msra.gmra.mxu1 %vm576_vm0, %v1699_v5 }
 0x6a6   : > { %3833 = vmatprep.mubr.msk.bf16.mxu1 %vm4127_vm1, %v4126_v8  ;;  %3818 = vmatpush3.bf16.msra.mxu1 %v3994_v34 }
 0x6a7   : > { %3819 = vmatprep.subr.bf16.mxu1 %v4126_v8 }
 0x6aa   : > { %3820 = vmatpush3.bf16.msra.mxu1 %v3995_v35 }
 0x6ab   : > { %3821 = vmatprep.subr.bf16.mxu1 %v4126_v8 }
 0x6ae   : > { %3822 = vmatpush3.bf16.msra.mxu1 %v3996_v36 }
 0x6af   : > { %3823 = vmatprep.subr.bf16.mxu1 %v4126_v8 }
 0x6b2   : > { %3824 = vmatpush3.bf16.msra.mxu1 %v3997_v37 }
 0x6b3   : > { %3825 = vmatprep.subr.bf16.mxu1 %v4126_v8 }
 0x6b6   : > { %3826 = vmatpush3.bf16.msra.mxu1 %v3998_v38 }
 0x6b7   : > { %3827 = vmatprep.subr.bf16.mxu1 %v4126_v8 }
 0x6ba   : > { %3828 = vmatpush3.bf16.msra.mxu1 %v3999_v39 }
 0x6bb   : > { %3829 = vmatprep.subr.bf16.mxu1 %v4126_v8 }
 0x6be   : > { %3830 = vmatpush3.bf16.msra.mxu1 %v4000_v40 }
 0x6bf   : > { %3831 = vmatprep.subr.bf16.mxu1 %v4126_v8 }
 0x6c2   : > { %3832 = vmatpush3.bf16.msra.mxu1 %v4001_v42 }
 0x6c3   : > { %3863 = vmatprep.subr.bf16.mxu1 %v4126_v8 }
 0x765   : > { %v1753_v6 = vpop.f32.mrf.mxu1 }
 0x766   : > { %v1759_v9 = vadd.f32 %v1753_v6, %v4287_v0  ;;  %v3992_v0 = vld [vmem:[%s4935_s10 + $0x8] sm:$0xff]  }
 0x767   : > { %v3807_v58 = vpop.f32.mrf.mxu1  ;;  %3810 = vmatpush3.bf16.msra.mxu0 %v3992_v0 }
 0x768   : > { %v4522_v10 = vadd.f32 %v3579_v7, %v1759_v9  ;;  %3811 = vmatprep.subr.bf16.mxu0 %v4126_v8  ;;  %v4002_v9 = vld [vmem:[%s4973_s4 + $0x18] sm:$0xff]   ;;  %v4003_v58 = vld [vmem:[%s4973_s4 + $0x10] sm:$0xff]  }
 0x769   : > { %v1756_v59 = vpop.f32.mrf.mxu1 }
 0x76a   : > { %v1768_v11 = vsel %vm576_vm0, %v4522_v10, 0.0 }
 0x76b   : > { %1769 = vadd.xlane.f32.xlu0 %v1768_v11  ;;  %v3808_v12 = vpop.f32.mrf.mxu1  ;;  %3812 = vmatpush3.bf16.msra.mxu0 %v3993_v19  ;;  %v3601_v19 = vld [vmem:[%s4976_s5 + $0x1] ss:$0 sm:$0xff] }
 0x76c   : > { %3837 = vmatprep.subr.bf16.mxu0 %v4126_v8 }
 0x7f4   : > { %v1770_v14 = vpop.xlane.xlu0 %1769 }
 0x7f5   : > { %v1771_v15 = vmul.f32 0.03125, %v1770_v14  ;;  %v3595_v14 = vld [vmem:[%s4974_s20 + $0x1] ss:$0 sm:$0xff] }
 0x7f7   : > { %v1772_v16 = vsub.f32 %v4522_v10, %v1771_v15 }
 0x7f9   : > { %v1773_v17 = vmul.f32 %v1772_v16, %v1772_v16 }
 0x7fb   : > { %v1774_v18 = vsel %vm576_vm0, %v1773_v17, 0.0 }
 0x7fc   : > { %1775 = vadd.xlane.f32.xlu1 %v1774_v18 }
 0x885   : > { %v1776_v20 = vpop.xlane.xlu1 %1775 }
 0x886   : > { %v1777_v21 = vmul.f32 0.03125, %v1776_v20 }
 0x888   : > { %v1778_v23 = vadd.f32 1e-05, %v1777_v21 }
 0x88a   : > { %4036 = vrsqrt.f32 %v1778_v23 }
 0x897   : > { %v4037_v24 = vpop.eup %4036 }
 0x898   : > { %v1780_v26 = vmul.f32 %v4037_v24, %v1772_v16  ;;  %v3596_v16 = vld [vmem:[%s4975_s3 + $0x1] ss:$0 sm:$0xff]  ;;  %s3671_s3 = sshll.u32 %s4255_s0, 7  ;;  %s4138_s0 = smov [#allocation2]  }
 0x89a   : > { %v1785_v31 = vmul.f32 %v3580_v25, %v1780_v26 }
 0x89c   : > { %v1790_v32 = vadd.f32 %v3581_v30, %v1785_v31 }
 0x89e   : > { %v1791_v33 = vpack.c.bf16 %v1790_v32, %v1790_v32 }
 0x8a0   : > { %3814 = vmatmul.mubr.msk.bf16.vlgmr.msra.gmra.mxu0 %vm576_vm0, %v1791_v33 }
 0x8a1   : > { %3841 = vmatprep.mubr.msk.bf16.mxu0 %vm4127_vm1, %v4126_v8  ;;  %3838 = vmatpush3.bf16.msra.mxu0 %v4002_v9 }
 0x8a2   : > { %3839 = vmatprep.subr.bf16.mxu0 %v4126_v8 }
 0x8a5   : > { %3840 = vmatpush3.bf16.msra.mxu0 %v4003_v58 }
 0x8a6   : > { %3845 = vmatprep.subr.bf16.mxu0 %v4126_v8 }
 0x960   : > { %v1850_v44 = vpop.f32.mrf.mxu0 }
 0x961   : > { %v1851_v45 = vadd.f32 %v3582_v43, %v1850_v44 }
 0x962   : > { %v3815_v46 = vpop.f32.mrf.mxu0 }
 0x963   : > { %v1856_v48 = vmul.f32 %v1851_v45, %v1851_v45 }
 0x964   : > { %v1853_v49 = vpop.f32.mrf.mxu0 }
 0x965   : > { %v1857_v52 = vmul.f32 %v1856_v48, %v1851_v45 }
 0x966   : > { %v3816_v27 = vpop.f32.mrf.mxu0 }
 0x967   : > { %v1858_v22 = vmul.f32 0.044715, %v1857_v52 }
 0x969   : > { %v1859_v53 = vadd.f32 %v1858_v22, %v1851_v45 }
 0x96b   : > { %v1860_v54 = vmul.f32 0.7978846, %v1859_v53 }
 0x96d   : > { %4038 = vtanh.f32 %v1860_v54 }
 0x97a   : > { %v4039_v55 = vpop.eup %4038 }
 0x97b   : > { %v1862_v56 = vadd.f32 1.0, %v4039_v55 }
 0x97d   : > { %v1863_v57 = vmul.f32 0.5, %v1862_v56 }
 0x97f   : > { %v1864_v60 = vmul.f32 %v1863_v57, %v1851_v45 }
 0x981   : > { %v1865_v50 = vpack.c.bf16 %v1864_v60, %v1864_v60 }
 0x983   : > { %3834 = vmatmul.mubr.bf16.vlgmr.msra.gmra.mxu1 %v1865_v50 }
 0x984   : > { %3865 = vmatprep.mubr.msk.bf16.mxu1 %vm4127_vm1, %v4126_v8 }
 0xa43   : > { %v1964_v51 = vpop.f32.mrf.mxu1 }
 0xa44   : > { %v1970_v29 = vadd.f32 %v1964_v51, %v4522_v10 }
 0xa45   : > { %v3835_v61 = vpop.f32.mrf.mxu1 }
 0xa46   : > { %v4586_v62 = vadd.f32 %v3594_v28, %v1970_v29 }
 0xa47   : > { %v1967_v63 = vpop.f32.mrf.mxu1 }
 0xa48   : > { %v1979_v1 = vsel %vm576_vm0, %v4586_v62, 0.0 }
 0xa49   : > { %1980 = vadd.xlane.f32.xlu0 %v1979_v1  ;;  %v3836_v2 = vpop.f32.mrf.mxu1 }
 0xad2   : > { %v1981_v3 = vpop.xlane.xlu0 %1980 }
 0xad3   : > { %v1982_v4 = vmul.f32 0.03125, %v1981_v3 }
 0xad5   : > { %v1983_v5 = vsub.f32 %v4586_v62, %v1982_v4 }
 0xad7   : > { %v1984_v6 = vmul.f32 %v1983_v5, %v1983_v5 }
 0xad9   : > { %v1985_v7 = vsel %vm576_vm0, %v1984_v6, 0.0 }
 0xada   : > { %1986 = vadd.xlane.f32.xlu0 %v1985_v7 }
 0xb63   : > { %v1987_v10 = vpop.xlane.xlu0 %1986 }
 0xb64   : > { %v1988_v59 = vmul.f32 0.03125, %v1987_v10 }
 0xb66   : > { %v1989_v11 = vadd.f32 1e-05, %v1988_v59 }
 0xb68   : > { %4040 = vrsqrt.f32 %v1989_v11 }
 0xb75   : > { %v4041_v12 = vpop.eup %4040 }
 0xb76   : > { %v1991_v15 = vmul.f32 %v4041_v12, %v1983_v5 }
 0xb78   : > { %v1996_v17 = vmul.f32 %v3595_v14, %v1991_v15 }
 0xb7a   : > { %v2001_v18 = vadd.f32 %v3596_v16, %v1996_v17 }
 0xb7c   : > { %v2002_v0 = vpack.c.bf16 %v2001_v18, %v2001_v18 }
 0xb7e   : > { %3842 = vmatmul.mubr.msk.bf16.vlgmr.msra.gmra.mxu0 %vm576_vm0, %v2002_v0 }
 0xb7f   : > { %3847 = vmatprep.mubr.msk.bf16.mxu0 %vm4127_vm1, %v4126_v8 }
 0xc3e   : > { %v2062_v20 = vpop.f32.mrf.mxu0 }
 0xc3f   : > { %v4612_v21 = vadd.f32 %v3601_v19, %v2062_v20 }
 0xc40   : > { %v3843_v23 = vpop.f32.mrf.mxu0 }
 0xc41   : > { %2222 = vrot.lane.b32.xlu0 %v4612_v21, %s4978_s1  ;;  %2220 = vrot.lane.b32.xlu1 %v4612_v21, %s4979_s26  ;;  %v2068_v31 = vmul.f32 0.35355338, %v4612_v21 }
 0xc42   : > { %v2065_v24 = vpop.f32.mrf.mxu0 }
 0xc44   : > { %v3844_v25 = vpop.f32.mrf.mxu0 }
 0xc45   : > { %2224 = vrot.lane.b32.xlu1 %v4612_v21, %s4980_s22 }
 0xc49   : > { %2226 = vrot.lane.b32.xlu1 %v4612_v21, %s4981_s24 }
 0xcb3   : > { %v4622_v26 = vpop.permute.xlu0 %2222  ;;  %v4624_v30 = vpop.permute.xlu1 %2220 }
 0xcb4   : > { %2230 = vrot.lane.b32.xlu1 %v4622_v26, %s4981_s24  ;;  %2228 = vrot.lane.b32.xlu0 %v4624_v30, %s4981_s24 }
 0xcb7   : > { %v4631_v32 = vpop.permute.xlu1 %2224 }
 0xcb8   : > { %2232 = vrot.lane.b32.xlu0 %v4631_v32, %s4981_s24  ;;  %2070 = vrot.lane.b32.xlu1 %v2068_v31, %s4979_s26  ;;  %s4983_s26 = smov 16   ;;  %s4985_s24 = smov 24  }
 0xcbb   : > { %v2227_v33 = vpop.permute.xlu1 %2226 }
 0xcbc   : > { %2073 = vrot.lane.b32.xlu0 %v2068_v31, %s4978_s1  ;;  %2076 = vrot.lane.b32.xlu1 %v2068_v31, %s4980_s22  ;;  %s4984_s22 = smov 8  }
 0xd26   : > { %v2229_v34 = vpop.permute.xlu0 %2228  ;;  %v2231_v35 = vpop.permute.xlu1 %2230 }
 0xd27   : > { %v2238_v36 = vcombine.low %v2227_v33, %v2231_v35  ;;  %v2239_v37 = vcombine.high %v2227_v33, %v2231_v35 }
 0xd29   : > { %v2246_v43 = vrot.slane %v2238_v36, %v4350_v41  ;;  %v2253_v44 = vrot.slane %v2239_v37, %v4350_v41 }
 0xd2a   : > { %v2233_v38 = vpop.permute.xlu0 %2232  ;;  %v2071_v39 = vpop.permute.xlu1 %2070 }
 0xd2b   : > { %v2254_v40 = vcombine.low %v2229_v34, %v2233_v38  ;;  %v2255_v42 = vcombine.high %v2229_v34, %v2233_v38 }
 0xd2d   : > { %v2262_v45 = vrot.slane %v2254_v40, %v4350_v41  ;;  %v2269_v46 = vrot.slane %v2255_v42, %v4350_v41 }
 0xd2e   : > { %v2074_v48 = vpop.permute.xlu0 %2073  ;;  %v2077_v49 = vpop.permute.xlu1 %2076 }
 0xd2f   : > { %v2270_v52 = vcombine.low %v2246_v43, %v2262_v45  ;;  %v2271_v27 = vcombine.high %v2246_v43, %v2262_v45  ;;  %v2286_v22 = vcombine.low %v2253_v44, %v2269_v46  ;;  %v2287_v53 = vcombine.high %v2253_v44, %v2269_v46 }
 0xd30   : > { %v2079_v54 = vcombine.low %v2068_v31, %v2074_v48  ;;  %v2080_v55 = vcombine.high %v2068_v31, %v2074_v48  ;;  %v2095_v56 = vcombine.low %v2071_v39, %v2077_v49  ;;  %v2096_v57 = vcombine.high %v2071_v39, %v2077_v49 }
 0xd31   : > { %v2278_v60 = vrot.slane %v2270_v52, %v4352_v47  ;;  %v2285_v50 = vrot.slane %v2271_v27, %v4352_v47  ;;  %v2294_v51 = vrot.slane %v2286_v22, %v4352_v47  ;;  %v2301_v28 = vrot.slane %v2287_v53, %v4352_v47 }
 0xd32   : > { %v2087_v29 = vrot.slane %v2079_v54, %v4350_v41  ;;  %v2094_v61 = vrot.slane %v2080_v55, %v4350_v41  ;;  %v2103_v63 = vrot.slane %v2095_v56, %v4350_v41  ;;  %v2110_v1 = vrot.slane %v2096_v57, %v4350_v41 }
 0xd33   : > { %v2306_v2 = vcombine.low %v2278_v60, %v2285_v50  ;;  %v3607_v3 = vcombine.high %v2278_v60, %v2285_v50  ;;  %v2322_v4 = vcombine.low %v2294_v51, %v2301_v28  ;;  %v3608_v5 = vcombine.high %v2294_v51, %v2301_v28 }
 0xd34   : > { %v2111_v6 = vcombine.low %v2087_v29, %v2103_v63  ;;  %v2112_v7 = vcombine.high %v2087_v29, %v2103_v63  ;;  %v2127_v9 = vcombine.low %v2094_v61, %v2110_v1  ;;  %v2128_v58 = vcombine.high %v2094_v61, %v2110_v1 }
 0xd35   : > { %v2313_v10 = vrot.slane %v2306_v2, %v4350_v41  ;;  %v2321_v59 = vrot.slane %v3607_v3, %v4350_v41  ;;  %v2329_v11 = vrot.slane %v2322_v4, %v4350_v41  ;;  %v2337_v12 = vrot.slane %v3608_v5, %v4350_v41 }
 0xd36   : > { %v2119_v14 = vrot.slane %v2111_v6, %v4352_v47  ;;  %v2126_v15 = vrot.slane %v2112_v7, %v4352_v47  ;;  %v2135_v16 = vrot.slane %v2127_v9, %v4352_v47  ;;  %v2142_v17 = vrot.slane %v2128_v58, %v4352_v47 }
 0xd37   : > { %v2338_v18 = vcombine.low %v2313_v10, %v2321_v59  ;;  %v2354_v0 = vcombine.low %v2329_v11, %v2337_v12  ;;  %v2339_v19 = vcombine.high %v2313_v10, %v2321_v59  ;;  %v2355_v20 = vcombine.high %v2329_v11, %v2337_v12 }
 0xd38   : > { %v2147_v23 = vcombine.low %v2119_v14, %v2126_v15  ;;  %v3605_v24 = vcombine.high %v2119_v14, %v2126_v15  ;;  %v2163_v25 = vcombine.low %v2135_v16, %v2142_v17  ;;  %v3606_v31 = vcombine.high %v2135_v16, %v2142_v17 }
 0xd39   : > { %v2346_v33 = vrot.slane %v2338_v18, %v4352_v47  ;;  %v2362_v34 = vrot.slane %v2354_v0, %v4352_v47  ;;  %v2353_v35 = vrot.slane %v2339_v19, %v4352_v47  ;;  %v2369_v36 = vrot.slane %v2355_v20, %v4352_v47 }
 0xd3a   : > { %v2154_v37 = vrot.slane %v2147_v23, %v4350_v41  ;;  %v2162_v38 = vrot.slane %v3605_v24, %v4350_v41  ;;  %v2170_v39 = vrot.slane %v2163_v25, %v4350_v41  ;;  %v2178_v40 = vrot.slane %v3606_v31, %v4350_v41 }
 0xd3b   : > { %v2370_v42 = vcombine.low %v2346_v33, %v2362_v34  ;;  %v2373_v43 = vcombine.high %v2353_v35, %v2369_v36  ;;  %v2371_v57 = vcombine.high %v2346_v33, %v2362_v34  ;;  %v2372_v63 = vcombine.low %v2353_v35, %v2369_v36 }
 0xd3c   : > { %v2179_v44 = vcombine.low %v2154_v37, %v2162_v38  ;;  %v2180_v45 = vcombine.high %v2154_v37, %v2162_v38  ;;  %v2195_v46 = vcombine.low %v2170_v39, %v2178_v40  ;;  %v2196_v48 = vcombine.high %v2170_v39, %v2178_v40 }
 0xd3d   : > { %v2374_v49 = vpack.c.bf16 %v2370_v42, %v2370_v42  ;;  %v2377_v52 = vpack.c.bf16 %v2373_v43, %v2373_v43  ;;  %v2375_v51 = vpack.c.bf16 %v2371_v57, %v2371_v57  ;;  %v2376_v2 = vpack.c.bf16 %v2372_v63, %v2372_v63 }
 0xd3e   : > { %v2187_v27 = vrot.slane %v2179_v44, %v4352_v47  ;;  %v2203_v22 = vrot.slane %v2195_v46, %v4352_v47  ;;  %v2194_v53 = vrot.slane %v2180_v45, %v4352_v47  ;;  %v2210_v54 = vrot.slane %v2196_v48, %v4352_v47 }
 0xd3f   : > { %v2534_v55 = vsel %vm1128_vm2, %v2374_v49, 0  ;;  %v2672_v56 = vsel %vm1128_vm2, %v2377_v52, 0  ;;  %v2580_v61 = vsel %vm1128_vm2, %v2375_v51, 0  ;;  %v2626_v4 = vsel %vm1128_vm2, %v2376_v2, 0 }
 0xd40   : > { %3846 = vmatpush3.bf16.xpose.msra.mxu0 %v2534_v55  ;;  %3864 = vmatpush3.bf16.xpose.msra.mxu1 %v2672_v56  ;;  %v2211_v60 = vcombine.low %v2187_v27, %v2203_v22  ;;  %v2214_v50 = vcombine.high %v2194_v53, %v2210_v54  ;;  %v2212_v1 = vcombine.high %v2187_v27, %v2203_v22 }
 0xd41   : > { %3851 = vmatprep.subr.bf16.mxu0 %v4126_v8  ;;  %3875 = vmatprep.subr.bf16.mxu1 %v4126_v8  ;;  %v2213_v5 = vcombine.low %v2194_v53, %v2210_v54 }
 0xd42   : > { %v2215_v28 = vpack.c.bf16 %v2211_v60, %v2211_v60  ;;  %v2218_v29 = vpack.c.bf16 %v2214_v50, %v2214_v50  ;;  %v2216_v3 = vpack.c.bf16 %v2212_v1, %v2212_v1 }
 0xd43   : > { %v2217_v6 = vpack.c.bf16 %v2213_v5, %v2213_v5 }
 0xd47   : > { %3848 = vmatmul.mubr.msk.bf16.vlgmr.msra.gmra.mxu0 %vm1128_vm2, %v2215_v28  ;;  %3866 = vmatmul.mubr.msk.bf16.vlgmr.msra.gmra.mxu1 %vm1128_vm2, %v2218_v29 }
 0xd48   : > { %3852 = vmatpush3.bf16.xpose.msra.mxu0 %v2580_v61  ;;  %3853 = vmatprep.mubr.msk.bf16.mxu0 %vm4127_vm1, %v4126_v8 }
 0xd49   : > { %3857 = vmatprep.subr.bf16.mxu0 %v4126_v8  ;;  %3877 = vmatprep.mubr.msk.bf16.mxu1 %vm4127_vm1, %v4126_v8 }
 0xd4f   : > { %3854 = vmatmul.mubr.msk.bf16.vlgmr.msra.gmra.mxu0 %vm1128_vm2, %v2216_v3 }
 0xd50   : > { %3858 = vmatpush3.bf16.xpose.msra.mxu0 %v2626_v4  ;;  %3859 = vmatprep.mubr.msk.bf16.mxu0 %vm4127_vm1, %v4126_v8 }
 0xd51   : > { %3869 = vmatprep.subr.bf16.mxu0 %v4126_v8 }
 0xd57   : > { %3860 = vmatmul.mubr.msk.bf16.vlgmr.msra.gmra.mxu0 %vm1128_vm2, %v2217_v6 }
 0xd58   : > { %3871 = vmatprep.mubr.msk.bf16.mxu0 %vm4127_vm1, %v4126_v8 }
 0xe07   : > { %v2570_v7 = vpop.f32.mrf.mxu0  ;;  %v2708_v9 = vpop.f32.mrf.mxu1 }
 0xe08   : > { %v2571_v58 = vadd.f32 %v2570_v7, %v4411_v13  ;;  %v2709_v33 = vadd.f32 %v2708_v9, %v4411_v13 }
 0xe09   : > { %v3849_v10 = vpop.f32.mrf.mxu0  ;;  %v3867_v59 = vpop.f32.mrf.mxu1 }
 0xe0a   : > { %v2714_v11 = vsel %vm1128_vm2, %v2571_v58, -inf  ;;  %v2723_v37 = vsel %vm1128_vm2, %v2709_v33, -inf }
 0xe0b   : > { %2715 = vmax.xlane.f32.xlu0 %v2714_v11  ;;  %v2573_v12 = vpop.f32.mrf.mxu0  ;;  %v2711_v14 = vpop.f32.mrf.mxu1 }
 0xe0d   : > { %v3850_v15 = vpop.f32.mrf.mxu0  ;;  %v3868_v16 = vpop.f32.mrf.mxu1 }
 0xe0f   : > { %v2616_v17 = vpop.f32.mrf.mxu0 }
 0xe10   : > { %v2617_v18 = vadd.f32 %v2616_v17, %v4411_v13 }
 0xe11   : > { %v3855_v0 = vpop.f32.mrf.mxu0 }
 0xe12   : > { %v2717_v19 = vsel %vm1128_vm2, %v2617_v18, -inf }
 0xe13   : > { %2718 = vmax.xlane.f32.xlu1 %v2717_v19  ;;  %v2619_v20 = vpop.f32.mrf.mxu0 }
 0xe15   : > { %v3856_v23 = vpop.f32.mrf.mxu0 }
 0xe17   : > { %v2662_v24 = vpop.f32.mrf.mxu0 }
 0xe18   : > { %v2663_v25 = vadd.f32 %v2662_v24, %v4411_v13 }
 0xe19   : > { %v3861_v31 = vpop.f32.mrf.mxu0 }
 0xe1a   : > { %v2720_v34 = vsel %vm1128_vm2, %v2663_v25, -inf }
 0xe1b   : > { %2721 = vmax.xlane.f32.xlu0 %v2720_v34  ;;  %v2665_v35 = vpop.f32.mrf.mxu0 }
 0xe1d   : > { %v3862_v36 = vpop.f32.mrf.mxu0 }
 0xe1f   : > { %2724 = vmax.xlane.f32.xlu0 %v2723_v37 }
 0xe24   : > { %2378 = vrot.lane.b32.xlu1 %v4612_v21, %s4982_s19 }
 0xe94   : > { %v2716_v38 = vpop.xlane.xlu0 %2715 }
 0xe95   : > { %v2726_v39 = vsub.f32 %v2571_v58, %v2716_v38 }
 0xe97   : > { %v2730_v40 = vmul.f32 1.442695, %v2726_v39 }
 0xe99   : > { %4042 = vpow2.f32 %v2730_v40 }
 0xe9c   : > { %v2719_v42 = vpop.xlane.xlu1 %2718 }
 0xe9d   : > { %v2727_v43 = vsub.f32 %v2617_v18, %v2719_v42 }
 0xe9f   : > { %v2732_v44 = vmul.f32 1.442695, %v2727_v43 }
 0xea0   : > { %v2379_v56 = vpop.permute.xlu1 %2378 }
 0xea1   : > { %4044 = vpow2.f32 %v2732_v44 }
 0xea4   : > { %v2722_v21 = vpop.xlane.xlu0 %2721 }
 0xea5   : > { %v2728_v27 = vsub.f32 %v2663_v25, %v2722_v21 }
 0xea6   : > { %v4700_v13 = vpop.eup %4042 }
 0xea7   : > { %v2738_v45 = vsel %vm1128_vm2, %v4700_v13, 0.0  ;;  %v2734_v53 = vmul.f32 1.442695, %v2728_v27 }
 0xea8   : > { %2739 = vadd.xlane.f32.xlu1 %v2738_v45  ;;  %v2725_v49 = vpop.xlane.xlu0 %2724 }
 0xea9   : > { %v2729_v52 = vsub.f32 %v2709_v33, %v2725_v49 }
 0xeab   : > { %v2736_v22 = vmul.f32 1.442695, %v2729_v52 }
 0xead   : > { %4046 = vpow2.f32 %v2736_v22 }
 0xeae   : > { %v4704_v46 = vpop.eup %4044  ;;  %4048 = vpow2.f32 %v2734_v53 }
 0xeaf   : > { %v2741_v48 = vsel %vm1128_vm2, %v4704_v46, 0.0 }
 0xeb0   : > { %2742 = vadd.xlane.f32.xlu0 %v2741_v48 }
 0xeb9   : > { %2382 = vrot.lane.b32.xlu1 %v4622_v26, %s4982_s19 }
 0xeba   : > { %v4714_v54 = vpop.eup %4046 }
 0xebb   : > { %v2747_v55 = vsel %vm1128_vm2, %v4714_v54, 0.0  ;;  %v4718_v26 = vpop.eup %4048 }
 0xebd   : > { %2384 = vrot.lane.b32.xlu1 %v4631_v32, %s4982_s19  ;;  %v2744_v32 = vsel %vm1128_vm2, %v4718_v26, 0.0 }
 0xec6   : > { %2380 = vrot.lane.b32.xlu0 %v4624_v30, %s4982_s19 }
 0xee1   : > { %2748 = vadd.xlane.f32.xlu1 %v2747_v55 }
 0xee5   : > { %2745 = vadd.xlane.f32.xlu0 %v2744_v32 }
 0xf31   : > { %v2740_v30 = vpop.xlane.xlu1 %2739 }
 0xf32   : > { %4050 = vrcp.f32 %v2740_v30 }
 0xf35   : > { %v2383_v57 = vpop.permute.xlu1 %2382 }
 0xf36   : > { %v2390_v50 = vcombine.low %v2379_v56, %v2383_v57  ;;  %v2391_v51 = vcombine.high %v2379_v56, %v2383_v57 }
 0xf38   : > { %v2398_v1 = vrot.slane %v2390_v50, %v4350_v41  ;;  %v2405_v2 = vrot.slane %v2391_v51, %v4350_v41 }
 0xf39   : > { %v2743_v60 = vpop.xlane.xlu0 %2742  ;;  %v2385_v28 = vpop.permute.xlu1 %2384 }
 0xf3a   : > { %4052 = vrcp.f32 %v2743_v60 }
 0xf3d   : > { %v2381_v29 = vpop.permute.xlu0 %2380 }
 0xf3e   : > { %v2406_v61 = vcombine.low %v2381_v29, %v2385_v28  ;;  %v2407_v63 = vcombine.high %v2381_v29, %v2385_v28 }
 0xf3f   : > { %v4051_v31 = vpop.eup %4050 }
 0xf40   : > { %v2414_v3 = vrot.slane %v2406_v61, %v4350_v41  ;;  %v2421_v4 = vrot.slane %v2407_v63, %v4350_v41  ;;  %v2754_v45 = vmul.f32 %v4051_v31, %v4700_v13 }
 0xf42   : > { %v2422_v5 = vcombine.low %v2398_v1, %v2414_v3  ;;  %v2423_v6 = vcombine.high %v2398_v1, %v2414_v3  ;;  %v2438_v7 = vcombine.low %v2405_v2, %v2421_v4  ;;  %v2439_v9 = vcombine.high %v2405_v2, %v2421_v4 }
 0xf43   : > { %v2758_v22 = vpack.c.bf16 %v2754_v45, %v2754_v45 }
 0xf44   : > { %v2430_v58 = vrot.slane %v2422_v5, %v4352_v47  ;;  %v2437_v10 = vrot.slane %v2423_v6, %v4352_v47  ;;  %v2446_v59 = vrot.slane %v2438_v7, %v4352_v47  ;;  %v2453_v11 = vrot.slane %v2439_v9, %v4352_v47 }
 0xf46   : > { %v2458_v12 = vcombine.low %v2430_v58, %v2437_v10  ;;  %v3609_v14 = vcombine.high %v2430_v58, %v2437_v10  ;;  %v2474_v15 = vcombine.low %v2446_v59, %v2453_v11  ;;  %v3610_v16 = vcombine.high %v2446_v59, %v2453_v11 }
 0xf47   : > { %v4053_v37 = vpop.eup %4052 }
 0xf48   : > { %v2465_v17 = vrot.slane %v2458_v12, %v4350_v41  ;;  %v2473_v18 = vrot.slane %v3609_v14, %v4350_v41  ;;  %v2481_v0 = vrot.slane %v2474_v15, %v4350_v41  ;;  %v2489_v19 = vrot.slane %v3610_v16, %v4350_v41 }
 0xf49   : > { %v2755_v48 = vmul.f32 %v4053_v37, %v4704_v46 }
 0xf4a   : > { %v2490_v20 = vcombine.low %v2465_v17, %v2473_v18  ;;  %v2506_v23 = vcombine.low %v2481_v0, %v2489_v19  ;;  %v2491_v24 = vcombine.high %v2465_v17, %v2473_v18  ;;  %v2507_v25 = vcombine.high %v2481_v0, %v2489_v19 }
 0xf4b   : > { %v2759_v53 = vpack.c.bf16 %v2755_v48, %v2755_v48 }
 0xf4c   : > { %v2498_v33 = vrot.slane %v2490_v20, %v4352_v47  ;;  %v2514_v34 = vrot.slane %v2506_v23, %v4352_v47  ;;  %v2505_v35 = vrot.slane %v2491_v24, %v4352_v47  ;;  %v2521_v36 = vrot.slane %v2507_v25, %v4352_v47  ;;  %v4004_v24 = vld [vmem:[%s4931_s6 + $0x18] sm:$0xff]  }
 0xf4e   : > { %v2522_v38 = vcombine.low %v2498_v33, %v2514_v34  ;;  %v2523_v39 = vcombine.high %v2498_v33, %v2514_v34  ;;  %v2524_v40 = vcombine.low %v2505_v35, %v2521_v36  ;;  %v2525_v42 = vcombine.high %v2505_v35, %v2521_v36 }
 0xf50   : > { %v2526_v43 = vpack.c.bf16 %v2522_v38, %v2522_v38  ;;  %v2527_v44 = vpack.c.bf16 %v2523_v39, %v2523_v39  ;;  %v2528_v52 = vpack.c.bf16 %v2524_v40, %v2524_v40  ;;  %v2529_v27 = vpack.c.bf16 %v2525_v42, %v2525_v42  ;;  %v4005_v39 = vld [vmem:[%s4931_s6 + $0x10] sm:$0xff]  }
 0xf52   : > { %v2766_v21 = vsel %vm1364_vm3, %v2526_v43, 0  ;;  %v2812_v49 = vsel %vm1364_vm3, %v2527_v44, 0  ;;  %v2858_v13 = vsel %vm1364_vm3, %v2528_v52, 0  ;;  %v2904_v46 = vsel %vm1364_vm3, %v2529_v27, 0 }
 0xf53   : > { %3870 = vmatpush3.bf16.msra.mxu0 %v2766_v21  ;;  %3876 = vmatpush3.bf16.msra.mxu1 %v2812_v49 }
 0xf54   : > { %3881 = vmatprep.subr.bf16.mxu0 %v4126_v8  ;;  %3887 = vmatprep.subr.bf16.mxu1 %v4126_v8 }
 0xf56   : > { %3872 = vmatmul.mubr.msk.bf16.vlgmr.msra.gmra.mxu0 %vm1128_vm2, %v2758_v22  ;;  %3878 = vmatmul.mubr.msk.bf16.vlgmr.msra.gmra.mxu1 %vm1128_vm2, %v2759_v53 }
 0xf57   : > { %3882 = vmatpush3.bf16.msra.mxu0 %v2858_v13  ;;  %3888 = vmatpush3.bf16.msra.mxu1 %v2904_v46 }
 0xf58   : > { %3889 = vmatprep.mubr.msk.bf16.mxu1 %vm4127_vm1, %v4126_v8  ;;  %3883 = vmatprep.mubr.msk.bf16.mxu0 %vm4127_vm1, %v4126_v8 }
 0xf59   : > { %3893 = vmatprep.subr.bf16.mxu0 %v4126_v8  ;;  %3901 = vmatprep.subr.bf16.mxu1 %v4126_v8 }
 0xf6a   : > { %v2749_v55 = vpop.xlane.xlu1 %2748 }
 0xf6b   : > { %4054 = vrcp.f32 %v2749_v55 }
 0xf6e   : > { %v2746_v32 = vpop.xlane.xlu0 %2745 }
 0xf6f   : > { %4056 = vrcp.f32 %v2746_v32 }
 0xf78   : > { %v4055_v56 = vpop.eup %4054 }
 0xf79   : > { %v2757_v30 = vmul.f32 %v4055_v56, %v4714_v54 }
 0xf7b   : > { %v2761_v57 = vpack.c.bf16 %v2757_v30, %v2757_v30 }
 0xf7c   : > { %v4057_v60 = vpop.eup %4056 }
 0xf7d   : > { %3890 = vmatmul.mubr.msk.bf16.vlgmr.msra.gmra.mxu1 %vm1128_vm2, %v2761_v57  ;;  %v2756_v50 = vmul.f32 %v4057_v60, %v4718_v26 }
 0xf7e   : > { %3905 = vmatprep.mubr.msk.bf16.mxu1 %vm4127_vm1, %v4126_v8 }
 0xf7f   : > { %v2760_v51 = vpack.c.bf16 %v2756_v50, %v2756_v50 }
 0xf81   : > { %3884 = vmatmul.mubr.msk.bf16.vlgmr.msra.gmra.mxu0 %vm1128_vm2, %v2760_v51 }
 0xf82   : > { %3897 = vmatprep.mubr.msk.bf16.mxu0 %vm4127_vm1, %v4126_v8  ;;  %3894 = vmatpush3.bf16.msra.mxu0 %v4004_v24  ;;  %v4013_v24 = vld [vmem:[%s4937_s12 + $0x50] sm:$0xff]  }
 0xf83   : > { %3895 = vmatprep.subr.bf16.mxu0 %v4126_v8 }
 0xf86   : > { %3896 = vmatpush3.bf16.msra.mxu0 %v4005_v39 }
 0xf87   : > { %3909 = vmatprep.subr.bf16.mxu0 %v4126_v8 }
0x1016   : > { %v2802_v28 = vpop.f32.mrf.mxu0  ;;  %v2848_v29 = vpop.f32.mrf.mxu1 }
0x1018   : > { %v3873_v61 = vpop.f32.mrf.mxu0  ;;  %v3879_v63 = vpop.f32.mrf.mxu1 }
0x101a   : > { %v2805_v54 = vpop.f32.mrf.mxu0  ;;  %v2851_v1 = vpop.f32.mrf.mxu1 }
0x101c   : > { %v3874_v2 = vpop.f32.mrf.mxu0  ;;  %v3880_v3 = vpop.f32.mrf.mxu1 }
0x103d   : > { %v2940_v4 = vpop.f32.mrf.mxu1 }
0x103e   : > { %v2962_v26 = vcombine.low %v2848_v29, %v2940_v4  ;;  %v2963_v6 = vcombine.high %v2848_v29, %v2940_v4 }
0x103f   : > { %v3891_v5 = vpop.f32.mrf.mxu1 }
0x1040   : > { %v2970_v12 = vrot.slane %v2962_v26, %v4350_v41  ;;  %v2977_v14 = vrot.slane %v2963_v6, %v4350_v41 }
0x1041   : > { %v2894_v7 = vpop.f32.mrf.mxu0  ;;  %v2943_v9 = vpop.f32.mrf.mxu1 }
0x1042   : > { %v2946_v58 = vcombine.low %v2802_v28, %v2894_v7  ;;  %v2947_v10 = vcombine.high %v2802_v28, %v2894_v7  ;;  %v3628_v28 = vld [vmem:[%s4932_s7 + $0x1] ss:$0 sm:$0xff]  ;;  %v4007_v7 = vld [vmem:[%s4935_s10 + $0x10] sm:$0xff]  }
0x1043   : > { %v3885_v59 = vpop.f32.mrf.mxu0  ;;  %v3892_v11 = vpop.f32.mrf.mxu1 }
0x1044   : > { %v2954_v15 = vrot.slane %v2946_v58, %v4350_v41  ;;  %v2961_v16 = vrot.slane %v2947_v10, %v4350_v41  ;;  %v3629_v11 = vld [vmem:[%s4933_s8 + $0x1] ss:$0 sm:$0xff] }
0x1045   : > { %v2897_v17 = vpop.f32.mrf.mxu0 }
0x1046   : > { %v2978_v18 = vcombine.low %v2954_v15, %v2970_v12  ;;  %v2979_v0 = vcombine.high %v2954_v15, %v2970_v12  ;;  %v2994_v19 = vcombine.low %v2961_v16, %v2977_v14  ;;  %v2995_v20 = vcombine.high %v2961_v16, %v2977_v14  ;;  %v3630_v14 = vld [vmem:[%s4934_s9 + $0x1] ss:$0 sm:$0xff] }
0x1047   : > { %v3886_v23 = vpop.f32.mrf.mxu0 }
0x1048   : > { %v2986_v25 = vrot.slane %v2978_v18, %v4352_v47  ;;  %v2993_v31 = vrot.slane %v2979_v0, %v4352_v47  ;;  %v3002_v33 = vrot.slane %v2994_v19, %v4352_v47  ;;  %v3009_v34 = vrot.slane %v2995_v20, %v4352_v47  ;;  %v4008_v18 = vld [vmem:[%s4937_s12 + $0x78] sm:$0xff]   ;;  %v4009_v0 = vld [vmem:[%s4937_s12 + $0x70] sm:$0xff]   ;;  %v4010_v19 = vld [vmem:[%s4937_s12 + $0x68] sm:$0xff]  }
0x1049   : > { %v4011_v20 = vld [vmem:[%s4937_s12 + $0x60] sm:$0xff]   ;;  %v4012_v23 = vld [vmem:[%s4937_s12 + $0x58] sm:$0xff]  }
0x104a   : > { %v3014_v35 = vcombine.low %v2986_v25, %v2993_v31  ;;  %v3619_v36 = vcombine.high %v2986_v25, %v2993_v31  ;;  %v3030_v37 = vcombine.low %v3002_v33, %v3009_v34  ;;  %v3620_v38 = vcombine.high %v3002_v33, %v3009_v34  ;;  %v4014_v25 = vld [vmem:[%s4937_s12 + $0x48] sm:$0xff]   ;;  %v4015_v31 = vld [vmem:[%s4937_s12 + $0x40] sm:$0xff]  }
0x104b   : > { %v3635_v33 = vld [vmem:[%s4936_s11 + $0x1] ss:$0 sm:$0xff] }
0x104c   : > { %v3021_v40 = vrot.slane %v3014_v35, %v4350_v41  ;;  %v3029_v42 = vrot.slane %v3619_v36, %v4350_v41  ;;  %v3037_v43 = vrot.slane %v3030_v37, %v4350_v41  ;;  %v3045_v44 = vrot.slane %v3620_v38, %v4350_v41 }
0x104e   : > { %v3047_v45 = vcombine.high %v3021_v40, %v3029_v42  ;;  %v3063_v48 = vcombine.high %v3037_v43, %v3045_v44  ;;  %v3046_v21 = vcombine.low %v3021_v40, %v3029_v42  ;;  %v3062_v49 = vcombine.low %v3037_v43, %v3045_v44 }
0x1050   : > { %v3061_v52 = vrot.slane %v3047_v45, %v4352_v47  ;;  %v3077_v27 = vrot.slane %v3063_v48, %v4352_v47  ;;  %v3054_v22 = vrot.slane %v3046_v21, %v4352_v47  ;;  %v3070_v53 = vrot.slane %v3062_v49, %v4352_v47 }
0x1052   : > { %v3080_v13 = vcombine.low %v3061_v52, %v3077_v27  ;;  %v3079_v46 = vcombine.high %v3054_v22, %v3070_v53  ;;  %v3078_v55 = vcombine.low %v3054_v22, %v3070_v53  ;;  %v3081_v41 = vcombine.high %v3061_v52, %v3077_v27  ;;  %v3663_v22 = vld [vmem:[%s4938_s13 + $0x1] ss:$0 sm:$0xff] }
0x1054   : > { %3087 = vrot.lane.b32.xlu1 %v3080_v13, %s4983_s26  ;;  %3083 = vrot.lane.b32.xlu0 %v3079_v46, %s4984_s22  ;;  %s564_s22 = sand.u32 1, %s4116_s28   ;;  %s4884_s26 = scalar_lea.hbm %s4943_s18, %s3671_s3 }
0x1055   : > { %s3476_s19 = scalar_lea.sflag [#allocation3], %s564_s22 }
0x1058   : > { %3091 = vrot.lane.b32.xlu0 %v3081_v41, %s4985_s24  ;;  %s3552_s24 = sshll.u32 %s564_s22, 3 }
0x1059   : > { %s566_s25 = scalar_lea.vmem [#allocation2], %s3552_s24  ;;  %s4068_s24 = sshll.u32 %s4138_s0, 4  ;;  %s4069_s24 = int_to_ptr.vmem [resolvable:$false] %s4068_s24 }
0x105a   : > { %s3489_s29 = sshll.u32 %s566_s25, 4  ;;  %s4070_s4 = scalar_lea.vmem %s4069_s24, 256  ;;  %s4886_s29 = int_to_ptr.vmem [resolvable:$true] %s3489_s29 }
0x105b   : > { %s4064_s21 = scalar_lea.vmem %s4886_s29, 128  ;;  %p4071_p0 = scmp.lt.s32.totalorder %s4886_s29, %s4069_s24 }
0x105c   : > { %p4065_p11 = scmp.ne.s32.totalorder %s4886_s29, %s4064_s21  ;;  %p4072_p1 = scmp.lt.s32.totalorder %s4070_s4, %s4064_s21 }
0x105e   : > { %p4066_p12 = pnand %p4065_p11, %p4272_p5  ;;  %p4073_p2 = por %p4072_p1, %p4071_p0 }
0x1060   : > { %p4067_p13 = pneg %p4066_p12 }
0x1062   : > { %p4074_p3 = pnand %p4073_p2, %p4067_p13 }
0x10c6   : > { %v3084_v32 = vpop.permute.xlu0 %3083  ;;  %v3088_v56 = vpop.permute.xlu1 %3087 }
0x10c7   : > { %v3094_v30 = vsel %vm1128_vm2, %v3078_v55, %v3084_v32 }
0x10c8   : > { %v3095_v60 = vsel %vm1695_vm4, %v3094_v30, %v3088_v56 }
0x10ca   : > { %v3092_v57 = vpop.permute.xlu0 %3091 }
0x10cb   : > { %v3096_v50 = vsel %vm1697_vm5, %v3095_v60, %v3092_v57 }
0x10cc   : > { %v3097_v47 = vpack.c.bf16 %v3096_v50, %v3096_v50 }
0x10ce   : > { %3898 = vmatmul.mubr.msk.bf16.vlgmr.msra.gmra.mxu0 %vm576_vm0, %v3097_v47  ;;  %v4016_v47 = vld [vmem:[%s4941_s16 + $0x8] sm:$0xff]  }
0x10cf   : > { %3925 = vmatprep.mubr.msk.bf16.mxu0 %vm4127_vm1, %v4126_v8  ;;  %3910 = vmatpush3.bf16.msra.mxu0 %v4008_v18 }
0x10d0   : > { %3911 = vmatprep.subr.bf16.mxu0 %v4126_v8 }
0x10d3   : > { %3912 = vmatpush3.bf16.msra.mxu0 %v4009_v0 }
0x10d4   : > { %3913 = vmatprep.subr.bf16.mxu0 %v4126_v8 }
0x10d7   : > { %3914 = vmatpush3.bf16.msra.mxu0 %v4010_v19 }
0x10d8   : > { %3915 = vmatprep.subr.bf16.mxu0 %v4126_v8 }
0x10db   : > { %3916 = vmatpush3.bf16.msra.mxu0 %v4011_v20 }
0x10dc   : > { %3917 = vmatprep.subr.bf16.mxu0 %v4126_v8 }
0x10df   : > { %3918 = vmatpush3.bf16.msra.mxu0 %v4012_v23 }
0x10e0   : > { %3919 = vmatprep.subr.bf16.mxu0 %v4126_v8 }
0x10e3   : > { %3920 = vmatpush3.bf16.msra.mxu0 %v4013_v24 }
0x10e4   : > { %3921 = vmatprep.subr.bf16.mxu0 %v4126_v8 }
0x10e7   : > { %3922 = vmatpush3.bf16.msra.mxu0 %v4014_v25 }
0x10e8   : > { %3923 = vmatprep.subr.bf16.mxu0 %v4126_v8 }
0x10eb   : > { %3924 = vmatpush3.bf16.msra.mxu0 %v4015_v31 }
0x118e   : > { %v3152_v51 = vpop.f32.mrf.mxu0 }
0x118f   : > { %v3158_v29 = vadd.f32 %v3152_v51, %v4586_v62  ;;  %v4006_v62 = vld [vmem:[%s4935_s10 + $0x18] sm:$0xff]   ;;  %v4017_v51 = vld [vmem:[%s4941_s16] sm:$0xff]  }
0x1190   : > { %v3899_v61 = vpop.f32.mrf.mxu0  ;;  %3902 = vmatpush3.bf16.msra.mxu1 %v4006_v62 }
0x1191   : > { %v4799_v63 = vadd.f32 %v3628_v28, %v3158_v29  ;;  %3903 = vmatprep.subr.bf16.mxu1 %v4126_v8 }
0x1192   : > { %v3155_v54 = vpop.f32.mrf.mxu0 }
0x1193   : > { %v3167_v1 = vsel %vm576_vm0, %v4799_v63, 0.0  ;;  %v3664_v54 = vld [vmem:[%s4939_s14] ss:$0 sm:$0xff] }
0x1194   : > { %3168 = vadd.xlane.f32.xlu1 %v3167_v1  ;;  %v3900_v2 = vpop.f32.mrf.mxu0  ;;  %3904 = vmatpush3.bf16.msra.mxu1 %v4007_v7 }
0x1195   : > { %3929 = vmatprep.subr.bf16.mxu1 %v4126_v8  ;;  %v3665_v2 = vld [vmem:[%s4940_s15] ss:$0 sm:$0xff] }
0x121d   : > { %v3169_v3 = vpop.xlane.xlu1 %3168 }
0x121e   : > { %v3170_v4 = vmul.f32 0.03125, %v3169_v3 }
0x1220   : > { %v3171_v5 = vsub.f32 %v4799_v63, %v3170_v4 }
0x1222   : > { %v3172_v26 = vmul.f32 %v3171_v5, %v3171_v5 }
0x1224   : > { %v3173_v6 = vsel %vm576_vm0, %v3172_v26, 0.0 }
0x1225   : > { %3174 = vadd.xlane.f32.xlu0 %v3173_v6 }
0x12ae   : > { %v3175_v9 = vpop.xlane.xlu0 %3174 }
0x12af   : > { %v3176_v58 = vmul.f32 0.03125, %v3175_v9 }
0x12b1   : > { %v3177_v10 = vadd.f32 1e-05, %v3176_v58 }
0x12b3   : > { %4058 = vrsqrt.f32 %v3177_v10 }
0x12c0   : > { %v4059_v59 = vpop.eup %4058 }
0x12c1   : > { %v3179_v12 = vmul.f32 %v4059_v59, %v3171_v5 }
0x12c3   : > { %v3184_v15 = vmul.f32 %v3629_v11, %v3179_v12 }
0x12c5   : > { %v3189_v16 = vadd.f32 %v3630_v14, %v3184_v15 }
0x12c7   : > { %v3190_v17 = vpack.c.bf16 %v3189_v16, %v3189_v16 }
0x12c9   : > { %3906 = vmatmul.mubr.msk.bf16.vlgmr.msra.gmra.mxu1 %vm576_vm0, %v3190_v17 }
0x12ca   : > { %3933 = vmatprep.mubr.msk.bf16.mxu1 %vm4127_vm1, %v4126_v8  ;;  %3930 = vmatpush3.bf16.msra.mxu1 %v4016_v47 }
0x12cb   : > { %3931 = vmatprep.subr.bf16.mxu1 %v4126_v8  ;;  %v3666_v8 = vld [vmem:[%s4942_s17] ss:$0 sm:$0xff] }
0x12ce   : > { %3932 = vmatpush3.bf16.msra.mxu1 %v4017_v51 }
0x1389   : > { %v3250_v34 = vpop.f32.mrf.mxu1 }
0x138a   : > { %v3251_v35 = vadd.f32 %v3635_v33, %v3250_v34 }
0x138b   : > { %v3907_v36 = vpop.f32.mrf.mxu1 }
0x138c   : > { %v3256_v37 = vmul.f32 %v3251_v35, %v3251_v35 }
0x138d   : > { %v3253_v38 = vpop.f32.mrf.mxu1 }
0x138e   : > { %v3257_v39 = vmul.f32 %v3256_v37, %v3251_v35 }
0x138f   : > { %v3908_v40 = vpop.f32.mrf.mxu1 }
0x1390   : > { %v3258_v42 = vmul.f32 0.044715, %v3257_v39 }
0x1392   : > { %v3259_v43 = vadd.f32 %v3258_v42, %v3251_v35 }
0x1394   : > { %v3260_v44 = vmul.f32 0.7978846, %v3259_v43 }
0x1396   : > { %4060 = vtanh.f32 %v3260_v44 }
0x13a3   : > { %v4061_v45 = vpop.eup %4060 }
0x13a4   : > { %v3262_v48 = vadd.f32 1.0, %v4061_v45 }
0x13a6   : > { %v3263_v21 = vmul.f32 0.5, %v3262_v48 }
0x13a8   : > { %v3264_v49 = vmul.f32 %v3263_v21, %v3251_v35 }
0x13aa   : > { %v3265_v52 = vpack.c.bf16 %v3264_v49, %v3264_v49 }
0x13ac   : > { %3926 = vmatmul.mubr.bf16.vlgmr.msra.gmra.mxu0 %v3265_v52 }
0x146c   : > { %v3365_v27 = vpop.f32.mrf.mxu0 }
0x146d   : > { %v3371_v53 = vadd.f32 %v3365_v27, %v4799_v63 }
0x146e   : > { %v3927_v13 = vpop.f32.mrf.mxu0 }
0x146f   : > { %v3377_v46 = vadd.f32 %v3663_v22, %v3371_v53 }
0x1470   : > { %v3368_v55 = vpop.f32.mrf.mxu0 }
0x1471   : > { %v3380_v41 = vsel %vm576_vm0, %v3377_v46, 0.0 }
0x1472   : > { %3381 = vadd.xlane.f32.xlu0 %v3380_v41  ;;  %v3928_v32 = vpop.f32.mrf.mxu0 }
0x14fb   : > { %v3382_v56 = vpop.xlane.xlu0 %3381 }
0x14fc   : > { %v3383_v30 = vmul.f32 0.03125, %v3382_v56 }
0x14fe   : > { %v3384_v57 = vsub.f32 %v3377_v46, %v3383_v30 }
0x1500   : > { %v3385_v60 = vmul.f32 %v3384_v57, %v3384_v57 }
0x1502   : > { %v3386_v50 = vsel %vm576_vm0, %v3385_v60, 0.0 }
0x1503   : > { %3387 = vadd.xlane.f32.xlu1 %v3386_v50 }
0x158c   : > { %v3388_v28 = vpop.xlane.xlu1 %3387 }
0x158d   : > { %v3389_v29 = vmul.f32 0.03125, %v3388_v28 }
0x158f   : > { %v3390_v61 = vadd.f32 1e-05, %v3389_v29 }
0x1591   : > { %4062 = vrsqrt.f32 %v3390_v61 }
0x159e   : > { %v4063_v63 = vpop.eup %4062 }
0x159f   : > { %v3392_v1 = vmul.f32 %v4063_v63, %v3384_v57 }
0x15a1   : > { %v3399_v3 = vmul.f32 %v3664_v54, %v3392_v1 }
0x15a3   : > { %v3406_v4 = vadd.f32 %v3665_v2, %v3399_v3 }
0x15a5   : > { %v3407_v5 = vpack.c.bf16 %v3406_v4, %v3406_v4 }
0x15a7   : > { %3934 = vmatmul.mubr.msk.bf16.vlgmr.msra.gmra.mxu1 %vm576_vm0, %v3407_v5 }
0x1667   : > { %v3468_v26 = vpop.f32.mrf.mxu1 }
0x1668   : > { %v3469_v6 = vadd.f32 %v3666_v8, %v3468_v26 }
0x1669   : > { %v3935_v62 = vpop.f32.mrf.mxu1 }
0x166a   : > { %3474 = vst [vmem:[%s566_s25] sm:$0xff] %v3469_v6 }
0x166b   : > { %v3471_v7 = vpop.f32.mrf.mxu1 }
0x166c   : > { %4077 = shalt.err (!%p4074_p3)
}
0x166d   : > { %s4078_s3 = scalar_lea.hbm %s4884_s26, 128  ;;  %s4082_s1 = scalar_lea.hbm %s4943_s18, 256 }
0x166e   : > { %p4079_p4 = scmp.ne.s32.totalorder %s4884_s26, %s4078_s3  ;;  %p4083_p9 = scmp.lt.s32.totalorder %s4884_s26, %s4943_s18 }
0x166f   : > { %p4084_p10 = scmp.lt.s32.totalorder %s4082_s1, %s4078_s3 }
0x1670   : > { %p4080_p7 = pnand %p4079_p4, %p4272_p5 }
0x1671   : > { %p4085_p11 = por %p4084_p10, %p4083_p9 }
0x1672   : > { %p4081_p8 = pneg %p4080_p7 }
0x1674   : > { %p4086_p12 = pnand %p4085_p11, %p4081_p8 }
0x1676   : > { %4089 = shalt.err (!%p4086_p12)
}
0x1677   : > { %3937 = dma.vmem_to_hbm [thread:$0]  (%p4272_p5), %s4886_s29, 128, %s4884_s26, %s3476_s19   ;;  %v3936_v9 = vpop.f32.mrf.mxu1 }
0x1678 PF: > { %p3943_p13 = scmp.ge.s32.totalorder %s4124_s30, 2  ;;  %s3501_s21 = sand.u32 1, %s4112_s27  }
0x1679   : > { %s3502_s5 = scalar_lea.sflag [#allocation3], %s3501_s21 }
0x167a   : > { %p3940_p0 = pnand %p3943_p13, %p4276_p6 }
0x167c   : > { %p3941_p1 = pneg %p3940_p0 }
0x167e   : > { %4107 = dma.done.wait (%p3941_p1), %s3502_s5, 128  }
0x167f   : > { %4109 = vsyncadd (%p3941_p1), %s3502_s5, 4294967168  ;;  %s4986_s30 = sld [smem:[#allocation6_spill]]  ;;  %s4989_s27 = smov %s4116_s28 }
0x1680   : > { %s4987_s24 = sld [smem:[#allocation5_spill]] }
0x1681   : > { %s4988_s29 = sld [smem:[#allocation7_spill]] }
0x1685   : > { %p28_p2 = scmp.ge.s32.totalorder %s4986_s30, 4  }
0x1686   : > { %s4990_s28 = smov %s4987_s24 }
0x1687   :  { %30 = sbr.rel (!%p28_p2) target bundleno = 10 (0xa), region = 131 }
0x168c   :  { %3507 = vsyncpa [#allocation3], 1 }
0x168d   :  { %3509 = vsyncpa [#allocation3 + $0x1], 1 }

</bundles_post_ra>
